<compile_context>
chip_gen: v6e
topology: v6e:2x2x1
jax: 0.10.0
libtpu: 0.0.40
codegen_flags: <defaults>
</compile_context>

<pallas_src>
import functools

import jax
import jax.numpy as jnp
from jax.experimental import pallas as pl
from jax.experimental.pallas import tpu as pltpu


def _attention_kernel(x_ref, wq_ref, kt_ref, v_ref, o_ref,
                      q_sc, m_sc, l_sc, acc_sc,
                      *, dk, dkp, n, tk, n_pad, approx_recip):
    j = pl.program_id(1)

    @pl.when(j == 0)
    def _init():
        # Project Q for this query-row tile once; fold 1/sqrt(dk) into Q
        # (O(TQ*dk) instead of O(TQ*N)).
        q = jnp.dot(x_ref[...], wq_ref[...], preferred_element_type=jnp.float32)
        q_sc[...] = (q * (1.0 / (float(dk) ** 0.5))).astype(q_sc.dtype)
        m_sc[...] = jnp.full_like(m_sc, -jnp.inf)
        l_sc[...] = jnp.zeros_like(l_sc)
        acc_sc[...] = jnp.zeros_like(acc_sc)

    # Scores strip for this key chunk: [TQ, DKP] x [DKP, TK] plain MXU matmul
    # (K arrives pre-transposed, so no in-kernel transpose is needed).
    scores = jnp.dot(q_sc[...], kt_ref[...], preferred_element_type=jnp.float32)

    if n_pad != n:  # static: mask padded key columns out of the softmax
        key_idx = j * tk + jax.lax.broadcasted_iota(jnp.int32, scores.shape, 1)
        scores = jnp.where(key_idx < n, scores, -jnp.inf)

    # Online softmax, kept unnormalized (normalization commutes with @V).
    # Elementwise math stays f32 (v5e has no bf16 VPU/EUP); on v6e/v7x one
    # could cast (scores - m_new) to bf16 before exp after re-profiling EUP.
    m_prev = m_sc[...]
    m_new = jnp.maximum(m_prev, jnp.max(scores, axis=1, keepdims=True))
    alpha = jnp.exp(m_prev - m_new)
    e = jnp.exp(scores - m_new)                                   # [TQ, TK] f32
    l_sc[...] = alpha * l_sc[...] + jnp.sum(e, axis=1, keepdims=True)
    acc_sc[...] = alpha * acc_sc[...] + jnp.dot(
        e.astype(v_ref.dtype), v_ref[...], preferred_element_type=jnp.float32)
    m_sc[...] = m_new

    @pl.when(j == pl.num_programs(1) - 1)
    def _finalize():
        matt = jax.nn.sigmoid(
            acc_sc[...] * pl.reciprocal(l_sc[...], approx=approx_recip))
        # Matt @ ones(dk, 1): row-sum over the true dk columns only (padded V
        # columns are exactly zero -> sigmoid(0)=0.5 and must be masked out).
        col = jax.lax.broadcasted_iota(jnp.int32, (1, dkp), 1)
        row_sum = jnp.sum(jnp.where(col < dk, matt, 0.0), axis=1, keepdims=True)
        # Lane-dense writeback: [TQ, 128] tile of replicated per-row sums.
        o_ref[...] = jnp.broadcast_to(row_sum, o_ref.shape)


def _round_up(x, m):
    return ((x + m - 1) // m) * m


def _vmem_capacity_bytes():
    try:
        return int(pltpu.get_tpu_info().vmem_capacity_bytes)
    except Exception:
        return 64 * 1024 * 1024  # conservative (v7x-sized) fallback


def attention_module(x, w_q, w_k, w_v, dk, *,
                     operand_dtype=jnp.bfloat16, tq_cap=None, tk_cap=512):
    """Forward of AttentionModule.

    x: [N, D] f32.  w_q/w_k/w_v: PyTorch nn.Linear weights [dk, D], no bias.
    operand_dtype: dtype of MXU operands (x tile, Wq, K^T, V, `e`).  bf16 gives
      2-4x MXU throughput on v5e/v6e/v7x; accumulation/elementwise stay f32.
      Pass jnp.float32 for strict validation against the f32 reference.
    """
    n, d = x.shape
    assert w_q.shape == (dk, d) and w_k.shape == (dk, d) and w_v.shape == (dk, d)

    vmem_cap = _vmem_capacity_bytes()
    if tq_cap is None:
        # v7x has 64 MiB VMEM/TC -> smaller query tile; v5e/v6e (128 MiB) -> 256.
        tq_cap = 128 if vmem_cap <= 64 * 1024 * 1024 else 256

    dkp = _round_up(dk, 128)               # pad projections to full 128-lane tiles
    tk = min(tk_cap, _round_up(n, 128))    # key-chunk width (lane aligned)
    n_pad = _round_up(n, tk)               # pad N; padded keys masked in-kernel,
                                           # padded query rows sliced off below
    tq = tq_cap if n_pad % tq_cap == 0 else 128   # n_pad is a multiple of 128

    f32 = jnp.float32
    x_pad = jnp.pad(x.astype(f32), ((0, n_pad - n), (0, 0)))      # [N_pad, D]

    # Hoisted K / V projections: computed once here (f32), cast for the MXU.
    # K is produced already transposed so the kernel's scores dot is plain.
    k_t = jnp.pad(x_pad @ w_k.astype(f32).T, ((0, 0), (0, dkp - dk))).T  # [DKP, N_pad]
    v_p = jnp.pad(x_pad @ w_v.astype(f32).T, ((0, 0), (0, dkp - dk)))    # [N_pad, DKP]
    w_qp = jnp.pad(w_q.astype(f32).T, ((0, 0), (0, dkp - dk)))           # [D, DKP]

    x_op = x_pad.astype(operand_dtype)
    k_t = k_t.astype(operand_dtype)
    v_p = v_p.astype(operand_dtype)
    w_qp = w_qp.astype(operand_dtype)

    kernel = functools.partial(
        _attention_kernel, dk=dk, dkp=dkp, n=n, tk=tk, n_pad=n_pad,
        approx_recip=(operand_dtype != jnp.float32))

    row_block = pl.pallas_call(
        kernel,
        out_shape=jax.ShapeDtypeStruct((n_pad, 128), jnp.float32),
        grid_spec=pltpu.PrefetchScalarGridSpec(
            num_scalar_prefetch=0,
            grid=(n_pad // tq, n_pad // tk),
            in_specs=[
                pl.BlockSpec((tq, d), lambda i, j: (i, 0)),     # X rows of this Q tile
                pl.BlockSpec((d, dkp), lambda i, j: (0, 0)),    # Wq (tiny, resident)
                pl.BlockSpec((dkp, tk), lambda i, j: (0, j)),   # K^T key chunk
                pl.BlockSpec((tk, dkp), lambda i, j: (j, 0)),   # V key chunk
            ],
            out_specs=pl.BlockSpec((tq, 128), lambda i, j: (i, 0)),
            scratch_shapes=[
                pltpu.VMEM((tq, dkp), operand_dtype),   # cached Q tile
                pltpu.VMEM((tq, 1), jnp.float32),       # running max  m_i
                pltpu.VMEM((tq, 1), jnp.float32),       # running sum  l_i
                pltpu.VMEM((tq, dkp), jnp.float32),     # running e@V accumulator
            ]),
        compiler_params=pltpu.CompilerParams(
            # Query tiles are independent -> megacore-shard on v7x; the key-chunk
            # axis carries the online-softmax state -> "arbitrary".
            dimension_semantics=("parallel", "arbitrary"),
            # ~75% of physical VMEM: ~96 MiB on v5e/v6e, ~48 MiB on v7x.
            vmem_limit_bytes=int(vmem_cap * 3 // 4)),
    )(x_op, w_qp, k_t, v_p)

    # The module's trailing `.repeat(1, N)` is pure duplication; materialize it
    # with XLA from the lane-dense per-row sums.  (The N x N f32 result is
    # 4*N^2 bytes of HBM and will dominate wall time at large N -- inherent to
    # the module's semantics, not the kernel.)
    return jnp.broadcast_to(row_block[:n, :1], (n, n))


def _reference(x, w_q, w_k, w_v, dk):
    q = x @ w_q.T
    k = x @ w_k.T
    v = x @ w_v.T
    scores = (q @ k.T) / jnp.sqrt(jnp.float32(dk))
    attn = jax.nn.softmax(scores, axis=1)
    matt = jax.nn.sigmoid(attn @ v)
    row = matt @ jnp.ones((dk, 1), jnp.float32)          # [N, 1]
    return jnp.repeat(row, x.shape[0], axis=1)           # [N, N]


if __name__ == "__main__":
    N, D, DK = 8, 32, 64  # seq=8, input_dim=32, dk=64 (module default)

    key = jax.random.PRNGKey(0)
    kx, kq, kk, kv = jax.random.split(key, 4)

    x = jax.random.normal(kx, (N, D), dtype=jnp.float32)
    # Deterministic "nn.Linear(input_dim, dk, bias=False)" weights: [dk, D],
    # uniform(-1/sqrt(D), 1/sqrt(D)) like PyTorch's default init.
    bound = 1.0 / jnp.sqrt(jnp.float32(D))
    w_q = jax.random.uniform(kq, (DK, D), jnp.float32, -bound, bound)
    w_k = jax.random.uniform(kk, (DK, D), jnp.float32, -bound, bound)
    w_v = jax.random.uniform(kv, (DK, D), jnp.float32, -bound, bound)

    ref = _reference(x, w_q, w_k, w_v, DK)

    # Strict check: f32 MXU operands (same data path as the reference).
    out32 = jax.block_until_ready(
        attention_module(x, w_q, w_k, w_v, DK, operand_dtype=jnp.float32))
    assert out32.shape == (N, N), out32.shape
    err32 = float(jnp.max(jnp.abs(out32 - ref)))
    assert jnp.allclose(out32, ref, atol=1e-4, rtol=1e-5), err32

    # Perf path: bf16 MXU operands (default) -- same math, looser tolerance.
    out16 = jax.block_until_ready(attention_module(x, w_q, w_k, w_v, DK))
    assert out16.shape == (N, N), out16.shape
    err16 = float(jnp.max(jnp.abs(out16 - ref)))
    assert jnp.allclose(out16, ref, atol=1e-2, rtol=2e-2), err16

    # Exercise the no-padding fast path (N a multiple of the key-chunk width).
    N2 = 128
    x2 = jax.random.normal(jax.random.PRNGKey(1), (N2, D), dtype=jnp.float32)
    ref2 = _reference(x2, w_q, w_k, w_v, DK)
    out2 = jax.block_until_ready(
        attention_module(x2, w_q, w_k, w_v, DK, operand_dtype=jnp.float32))
    assert out2.shape == (N2, N2), out2.shape
    err2 = float(jnp.max(jnp.abs(out2 - ref2)))
    assert jnp.allclose(out2, ref2, atol=1e-4, rtol=1e-5), err2

    print("KERNEL_OK")
</pallas_src>

<mosaic_0001>
module attributes {stable_mosaic.version = 11 : i64} {
  func.func @_attention_kernel(%arg0: i32, %arg1: i32, %arg2: memref<128x32xf32, #tpu.memory_space<vmem>>, %arg3: memref<32x128xf32, #tpu.memory_space<vmem>>, %arg4: memref<128x128xf32, #tpu.memory_space<vmem>>, %arg5: memref<128x128xf32, #tpu.memory_space<vmem>>, %arg6: memref<128x128xf32, #tpu.memory_space<vmem>>, %arg7: memref<128x128xf32, #tpu.memory_space<vmem>>, %arg8: memref<128x1xf32, #tpu.memory_space<vmem>>, %arg9: memref<128x1xf32, #tpu.memory_space<vmem>>, %arg10: memref<128x128xf32, #tpu.memory_space<vmem>>) attributes {dimension_semantics = [#tpu.dimension_semantics<parallel>, #tpu.dimension_semantics<arbitrary>], iteration_bounds = array<i64: 1, 1>, scalar_prefetch = 0 : i64, scratch_operands = 4 : i64, tpu.core_type = #tpu.core_type<tc>, window_params = [{transform_indices = @transform_0, window_bounds = array<i64: 128, 32>}, {pipeline_mode = #tpu.pipeline_mode<synchronous>, transform_indices = @transform_1, window_bounds = array<i64: 32, 128>}, {transform_indices = @transform_2, window_bounds = array<i64: 128, 128>}, {transform_indices = @transform_3, window_bounds = array<i64: 128, 128>}, {transform_indices = @transform_4, window_bounds = array<i64: 128, 128>}]} {
    %c0_i32 = arith.constant 0 : i32
    %0 = arith.cmpi eq, %arg1, %c0_i32 : i32
    %1 = arith.extui %0 : i1 to i32
    %c0_i32_0 = arith.constant 0 : i32
    %2 = arith.cmpi ne, %1, %c0_i32_0 : i32
    scf.if %2 {
      %c0_24 = arith.constant 0 : index
      %c0_25 = arith.constant 0 : index
      %40 = vector.load %arg2[%c0_24, %c0_25] : memref<128x32xf32, #tpu.memory_space<vmem>>, vector<128x32xf32>
      %c0_26 = arith.constant 0 : index
      %c0_27 = arith.constant 0 : index
      %41 = vector.load %arg3[%c0_26, %c0_27] : memref<32x128xf32, #tpu.memory_space<vmem>>, vector<32x128xf32>
      %cst_28 = arith.constant dense<0.000000e+00> : vector<128x128xf32>
      %42 = tpu.matmul %40, %41, %cst_28 {dimension_numbers = #tpu.dot_dimension_numbers<[1], [0], [0], [1], [0, 0, 1, 1], [], []>} : vector<128x32xf32>, vector<32x128xf32>, vector<128x128xf32> -> vector<128x128xf32>
      %cst_29 = arith.constant 1.250000e-01 : f32
      %43 = vector.broadcast %cst_29 : f32 to vector<128x128xf32>
      %44 = arith.mulf %42, %43 : vector<128x128xf32>
      %c0_30 = arith.constant 0 : index
      %c0_31 = arith.constant 0 : index
      %45 = vector.load %arg7[%c0_30, %c0_31] : memref<128x128xf32, #tpu.memory_space<vmem>>, vector<128x128xf32>
      tpu.vector_store %arg7[%c0_30, %c0_31], %44 {strides = array<i32>} : memref<128x128xf32, #tpu.memory_space<vmem>>, vector<128x128xf32>,
      %cst_32 = arith.constant 0xFF800000 : f32
      %46 = vector.broadcast %cst_32 : f32 to vector<128x1xf32>
      %c0_33 = arith.constant 0 : index
      %c0_34 = arith.constant 0 : index
      %47 = vector.load %arg8[%c0_33, %c0_34] : memref<128x1xf32, #tpu.memory_space<vmem>>, vector<128x1xf32>
      tpu.vector_store %arg8[%c0_33, %c0_34], %46 {strides = array<i32>} : memref<128x1xf32, #tpu.memory_space<vmem>>, vector<128x1xf32>,
      %cst_35 = arith.constant 0.000000e+00 : f32
      %48 = vector.broadcast %cst_35 : f32 to vector<128x1xf32>
      %c0_36 = arith.constant 0 : index
      %c0_37 = arith.constant 0 : index
      %49 = vector.load %arg9[%c0_36, %c0_37] : memref<128x1xf32, #tpu.memory_space<vmem>>, vector<128x1xf32>
      tpu.vector_store %arg9[%c0_36, %c0_37], %48 {strides = array<i32>} : memref<128x1xf32, #tpu.memory_space<vmem>>, vector<128x1xf32>,
      %cst_38 = arith.constant 0.000000e+00 : f32
      %50 = vector.broadcast %cst_38 : f32 to vector<128x128xf32>
      %c0_39 = arith.constant 0 : index
      %c0_40 = arith.constant 0 : index
      %51 = vector.load %arg10[%c0_39, %c0_40] : memref<128x128xf32, #tpu.memory_space<vmem>>, vector<128x128xf32>
      tpu.vector_store %arg10[%c0_39, %c0_40], %50 {strides = array<i32>} : memref<128x128xf32, #tpu.memory_space<vmem>>, vector<128x128xf32>,
    } else {
    }
    %c0 = arith.constant 0 : index
    %c0_1 = arith.constant 0 : index
    %3 = vector.load %arg7[%c0, %c0_1] : memref<128x128xf32, #tpu.memory_space<vmem>>, vector<128x128xf32>
    %c0_2 = arith.constant 0 : index
    %c0_3 = arith.constant 0 : index
    %4 = vector.load %arg4[%c0_2, %c0_3] : memref<128x128xf32, #tpu.memory_space<vmem>>, vector<128x128xf32>
    %cst = arith.constant dense<0.000000e+00> : vector<128x128xf32>
    %5 = tpu.matmul %3, %4, %cst {dimension_numbers = #tpu.dot_dimension_numbers<[1], [0], [0], [1], [0, 0, 1, 1], [], []>} : vector<128x128xf32>, vector<128x128xf32>, vector<128x128xf32> -> vector<128x128xf32>
    %c128_i32 = arith.constant 128 : i32
    %6 = arith.muli %arg1, %c128_i32 : i32
    %7 = tpu.iota {dimensions = array<i32: 1>} : vector<128x128xi32>
    %8 = vector.broadcast %6 : i32 to vector<128x128xi32>
    %9 = arith.addi %8, %7 : vector<128x128xi32>
    %c8_i32 = arith.constant 8 : i32
    %10 = vector.broadcast %c8_i32 : i32 to vector<128x128xi32>
    %11 = arith.cmpi slt, %9, %10 : vector<128x128xi32>
    %cst_4 = arith.constant 0xFF800000 : f32
    %12 = vector.broadcast %cst_4 : f32 to vector<128x128xf32>
    %13 = arith.select %11, %5, %12 : vector<128x128xi1>, vector<128x128xf32>
    %c0_5 = arith.constant 0 : index
    %c0_6 = arith.constant 0 : index
    %14 = vector.load %arg8[%c0_5, %c0_6] : memref<128x1xf32, #tpu.memory_space<vmem>>, vector<128x1xf32>
    %cst_7 = arith.constant dense<0xFF800000> : vector<128xf32>
    %15 = vector.multi_reduction <maximumf>, %13, %cst_7 [1] : vector<128x128xf32> to vector<128xf32>
    %16 = vector.shape_cast %15 : vector<128xf32> to vector<128x1xf32>
    %17 = arith.maximumf %14, %16 : vector<128x1xf32>
    %18 = arith.subf %14, %17 : vector<128x1xf32>
    %19 = math.exp %18 : vector<128x1xf32>
    %20 = vector.broadcast %17 : vector<128x1xf32> to vector<128x128xf32>
    %21 = arith.subf %13, %20 : vector<128x128xf32>
    %22 = math.exp %21 : vector<128x128xf32>
    %c0_8 = arith.constant 0 : index
    %c0_9 = arith.constant 0 : index
    %23 = vector.load %arg9[%c0_8, %c0_9] : memref<128x1xf32, #tpu.memory_space<vmem>>, vector<128x1xf32>
    %24 = arith.mulf %19, %23 : vector<128x1xf32>
    %cst_10 = arith.constant dense<0.000000e+00> : vector<128xf32>
    %25 = vector.multi_reduction <add>, %22, %cst_10 [1] : vector<128x128xf32> to vector<128xf32>
    %26 = vector.shape_cast %25 : vector<128xf32> to vector<128x1xf32>
    %27 = arith.addf %24, %26 : vector<128x1xf32>
    %c0_11 = arith.constant 0 : index
    %c0_12 = arith.constant 0 : index
    %28 = vector.load %arg9[%c0_11, %c0_12] : memref<128x1xf32, #tpu.memory_space<vmem>>, vector<128x1xf32>
    tpu.vector_store %arg9[%c0_11, %c0_12], %27 {strides = array<i32>} : memref<128x1xf32, #tpu.memory_space<vmem>>, vector<128x1xf32>,
    %c0_13 = arith.constant 0 : index
    %c0_14 = arith.constant 0 : index
    %29 = vector.load %arg10[%c0_13, %c0_14] : memref<128x128xf32, #tpu.memory_space<vmem>>, vector<128x128xf32>
    %30 = vector.broadcast %19 : vector<128x1xf32> to vector<128x128xf32>
    %31 = arith.mulf %30, %29 : vector<128x128xf32>
    %c0_15 = arith.constant 0 : index
    %c0_16 = arith.constant 0 : index
    %32 = vector.load %arg5[%c0_15, %c0_16] : memref<128x128xf32, #tpu.memory_space<vmem>>, vector<128x128xf32>
    %cst_17 = arith.constant dense<0.000000e+00> : vector<128x128xf32>
    %33 = tpu.matmul %22, %32, %cst_17 {dimension_numbers = #tpu.dot_dimension_numbers<[1], [0], [0], [1], [0, 0, 1, 1], [], []>} : vector<128x128xf32>, vector<128x128xf32>, vector<128x128xf32> -> vector<128x128xf32>
    %34 = arith.addf %31, %33 : vector<128x128xf32>
    %c0_18 = arith.constant 0 : index
    %c0_19 = arith.constant 0 : index
    %35 = vector.load %arg10[%c0_18, %c0_19] : memref<128x128xf32, #tpu.memory_space<vmem>>, vector<128x128xf32>
    tpu.vector_store %arg10[%c0_18, %c0_19], %34 {strides = array<i32>} : memref<128x128xf32, #tpu.memory_space<vmem>>, vector<128x128xf32>,
    %c0_20 = arith.constant 0 : index
    %c0_21 = arith.constant 0 : index
    %36 = vector.load %arg8[%c0_20, %c0_21] : memref<128x1xf32, #tpu.memory_space<vmem>>, vector<128x1xf32>
    tpu.vector_store %arg8[%c0_20, %c0_21], %17 {strides = array<i32>} : memref<128x1xf32, #tpu.memory_space<vmem>>, vector<128x1xf32>,
    %c0_i32_22 = arith.constant 0 : i32
    %37 = arith.cmpi eq, %arg1, %c0_i32_22 : i32
    %38 = arith.extui %37 : i1 to i32
    %c0_i32_23 = arith.constant 0 : i32
    %39 = arith.cmpi ne, %38, %c0_i32_23 : i32
    scf.if %39 {
      %c0_24 = arith.constant 0 : index
      %c0_25 = arith.constant 0 : index
      %40 = vector.load %arg10[%c0_24, %c0_25] : memref<128x128xf32, #tpu.memory_space<vmem>>, vector<128x128xf32>
      %c0_26 = arith.constant 0 : index
      %c0_27 = arith.constant 0 : index
      %41 = vector.load %arg9[%c0_26, %c0_27] : memref<128x1xf32, #tpu.memory_space<vmem>>, vector<128x1xf32>
      %42 = tpu.reciprocal %41 : vector<128x1xf32> -> vector<128x1xf32>
      %43 = vector.broadcast %42 : vector<128x1xf32> to vector<128x128xf32>
      %44 = arith.mulf %40, %43 : vector<128x128xf32>
      %45 = arith.negf %44 : vector<128x128xf32>
      %46 = math.exp %45 : vector<128x128xf32>
      %cst_28 = arith.constant 1.000000e+00 : f32
      %47 = vector.broadcast %cst_28 : f32 to vector<128x128xf32>
      %48 = arith.addf %47, %46 : vector<128x128xf32>
      %49 = arith.divf %47, %48 : vector<128x128xf32>
      %50 = tpu.iota {dimensions = array<i32: 1>} : vector<1x128xi32>
      %c64_i32 = arith.constant 64 : i32
      %51 = vector.broadcast %c64_i32 : i32 to vector<1x128xi32>
      %52 = arith.cmpi slt, %50, %51 : vector<1x128xi32>
      %cst_29 = arith.constant 0.000000e+00 : f32
      %53 = vector.shape_cast %52 : vector<1x128xi1> to vector<1x128xi1>
      %54 = vector.broadcast %53 : vector<1x128xi1> to vector<128x128xi1>
      %55 = vector.broadcast %cst_29 : f32 to vector<128x128xf32>
      %56 = arith.select %54, %49, %55 : vector<128x128xi1>, vector<128x128xf32>
      %cst_30 = arith.constant dense<0.000000e+00> : vector<128xf32>
      %57 = vector.multi_reduction <add>, %56, %cst_30 [1] : vector<128x128xf32> to vector<128xf32>
      %58 = vector.shape_cast %57 : vector<128xf32> to vector<128x1xf32>
      %59 = vector.shape_cast %58 : vector<128x1xf32> to vector<128x1xf32>
      %60 = vector.broadcast %59 : vector<128x1xf32> to vector<128x128xf32>
      %c0_31 = arith.constant 0 : index
      %c0_32 = arith.constant 0 : index
      %61 = vector.load %arg6[%c0_31, %c0_32] : memref<128x128xf32, #tpu.memory_space<vmem>>, vector<128x128xf32>
      tpu.vector_store %arg6[%c0_31, %c0_32], %60 {strides = array<i32>} : memref<128x128xf32, #tpu.memory_space<vmem>>, vector<128x128xf32>,
    } else {
    }
    return
  }
  func.func @transform_0(%arg0: i32, %arg1: i32) -> (i32, i32) {
    %c0_i32 = arith.constant 0 : i32
    %c0_i32_0 = arith.constant 0 : i32
    return %arg0, %c0_i32 : i32, i32
  }
  func.func @transform_1(%arg0: i32, %arg1: i32) -> (i32, i32) {
    %c0_i32 = arith.constant 0 : i32
    %c0_i32_0 = arith.constant 0 : i32
    %c0_i32_1 = arith.constant 0 : i32
    return %c0_i32, %c0_i32_0 : i32, i32
  }
  func.func @transform_2(%arg0: i32, %arg1: i32) -> (i32, i32) {
    %c0_i32 = arith.constant 0 : i32
    %c0_i32_0 = arith.constant 0 : i32
    return %c0_i32, %arg1 : i32, i32
  }
  func.func @transform_3(%arg0: i32, %arg1: i32) -> (i32, i32) {
    %c0_i32 = arith.constant 0 : i32
    %c0_i32_0 = arith.constant 0 : i32
    return %arg1, %c0_i32 : i32, i32
  }
  func.func @transform_4(%arg0: i32, %arg1: i32) -> (i32, i32) {
    %c0_i32 = arith.constant 0 : i32
    %c0_i32_0 = arith.constant 0 : i32
    return %arg0, %c0_i32 : i32, i32
  }
}

</mosaic_0001>

<bundles_post_ra>
// kernel: tpu_custom_call.1
= control target key start
LH: loop header
LB: loop body
LE: loop exit
PB: predicated region body
PF: predicated region fallthrough
CT: control target
= control target key end

     0   :  { %9 = vsyncpa [#allocation7], 0  ;;  %s2640_s0 = inlined_call_operand.vmem [shape: f32[128,32], index: 0, kind: input, shape index: {}]   ;;  %s2641_s1 = inlined_call_operand.vmem [shape: f32[32,128], index: 1, kind: input, shape index: {}]   ;;  %s2642_s2 = inlined_call_operand.vmem [shape: f32[128,128], index: 2, kind: input, shape index: {}]   ;;  %s2643_s3 = inlined_call_operand.hbm [shape: f32[128,128], index: 3, kind: input, shape index: {}]   ;;  %s2644_s4 = inlined_call_operand.hbm [shape: f32[128,128], index: 4, kind: output, shape index: {}]  }
   0x1   :  { %10 = vsyncpa [#allocation8], 0  ;;  %s2020_s15 = smov [#allocation6]  }
   0x2   :  { %s22_s16 = sshll.u32 %s2020_s15, 4  ;;  %s23_s16 = int_to_ptr.vmem [resolvable:$true] %s22_s16 }
   0x3   :  { %s1984_s17 = scalar_lea.vmem %s23_s16, 2048  ;;  %p1989_p1 = scmp.lt.s32.totalorder %s23_s16, %s23_s16 }
   0x4   :  { %p1985_p0 = scmp.ne.s32.totalorder %s23_s16, %s1984_s17  ;;  %p1990_p2 = scmp.lt.s32.totalorder %s1984_s17, %s1984_s17 }
   0x6   :  { %p1991_p3 = por %p1990_p2, %p1989_p1 }
   0x8   :  { %p1992_p4 = pnand %p1991_p3, %p1985_p0 }
   0xa   :  { %1995 = shalt.err (!%p1992_p4)
}
   0xb   :  { %s2021_s18 = smov 128   ;;  %s2022_s19 = smov 8  }
   0xc   :  { %28 = dma.hbm_to_vmem [thread:$0]  %s2643_s3, 2048, %s23_s16, [#allocation7], %s2021_s18, %s2021_s18, %s2022_s19  }
   0xd   :  { %2016 = dma.done.wait [#allocation7], 2048  }
   0xe   :  { %2017 = vsyncadd [#allocation7], 4294965248  ;;  %vm56_vm0 = vcmask 261120   ;;  %v55_v0 = vld [vmem:[%s2641_s1 + $0x18] sm:$0xff]  ;;  %v54_v1 = vld [vmem:[%s2641_s1 + $0x10] sm:$0xff]  ;;  %vm282_vm1 = vcmask 7168  }
   0xf   :  { %1631 = vmatprep.subr.mxu0 %v55_v0  ;;  %v36_v2 = vld [vmem:[%s2640_s0] sm:$0xff]  ;;  %v53_v3 = vld [vmem:[%s2641_s1 + $0x8] sm:$0xff]  ;;  %v362_v6 = vld [vmem:[%s2642_s2 + $0x78] sm:$0xff] }
  0x10   :  { %1632 = vmatpush3.msra.mxu0 %v55_v0  ;;  %1639 = vmatprep.mubr.msk.f32.mxu0 %vm56_vm0, %v36_v2  ;;  %v52_v4 = vld [vmem:[%s2641_s1] sm:$0xff]  ;;  %v37_v5 = vld [vmem:[%s2640_s0 + $0x8] sm:$0xff]  ;;  %v38_v7 = vld [vmem:[%s2640_s0 + $0x10] sm:$0xff] }
  0x11   :  { %1633 = vmatprep.subr.mxu0 %v54_v1  ;;  %1663 = vmatprep.subr.mxu1 %v362_v6  ;;  %v361_v8 = vld [vmem:[%s2642_s2 + $0x70] sm:$0xff]  ;;  %v360_v9 = vld [vmem:[%s2642_s2 + $0x68] sm:$0xff]  ;;  %v39_v10 = vld [vmem:[%s2640_s0 + $0x18] sm:$0xff] }
  0x12   :  { %1634 = vmatpush3.msra.mxu0 %v54_v1  ;;  %1664 = vmatpush3.msra.mxu1 %v362_v6  ;;  %v359_v11 = vld [vmem:[%s2642_s2 + $0x60] sm:$0xff]  ;;  %v358_v13 = vld [vmem:[%s2642_s2 + $0x58] sm:$0xff]  ;;  %v41_v14 = vld [vmem:[%s2640_s0 + $0x28] sm:$0xff] }
  0x13   :  { %1635 = vmatprep.subr.mxu0 %v53_v3  ;;  %1665 = vmatprep.subr.mxu1 %v361_v8  ;;  %v40_v12 = vld [vmem:[%s2640_s0 + $0x20] sm:$0xff]  ;;  %v357_v15 = vld [vmem:[%s2642_s2 + $0x50] sm:$0xff]  ;;  %v356_v17 = vld [vmem:[%s2642_s2 + $0x48] sm:$0xff] }
  0x14   :  { %1636 = vmatpush3.msra.mxu0 %v53_v3  ;;  %1666 = vmatpush3.msra.mxu1 %v361_v8  ;;  %v42_v16 = vld [vmem:[%s2640_s0 + $0x30] sm:$0xff]  ;;  %v43_v18 = vld [vmem:[%s2640_s0 + $0x38] sm:$0xff]  ;;  %v355_v19 = vld [vmem:[%s2642_s2 + $0x40] sm:$0xff] }
  0x15   :  { %1637 = vmatprep.subr.mxu0 %v52_v4  ;;  %1667 = vmatprep.subr.mxu1 %v360_v9  ;;  %v44_v20 = vld [vmem:[%s2640_s0 + $0x40] sm:$0xff]  ;;  %v354_v21 = vld [vmem:[%s2642_s2 + $0x38] sm:$0xff]  ;;  %v45_v22 = vld [vmem:[%s2640_s0 + $0x48] sm:$0xff] }
  0x16   :  { %1638 = vmatpush3.msra.mxu0 %v52_v4  ;;  %1668 = vmatpush3.msra.mxu1 %v360_v9  ;;  %v353_v23 = vld [vmem:[%s2642_s2 + $0x30] sm:$0xff]  ;;  %v352_v25 = vld [vmem:[%s2642_s2 + $0x28] sm:$0xff]  ;;  %v47_v26 = vld [vmem:[%s2640_s0 + $0x58] sm:$0xff]  ;;  %v2023_v4 = vmov -inf  }
  0x17   :  { %1640 = vmatmul.mubr.msk.f32.vlgmr.msra.gmra.mxu0 %vm56_vm0, %v37_v5  ;;  %1669 = vmatprep.subr.mxu1 %v359_v11  ;;  %v46_v24 = vld [vmem:[%s2640_s0 + $0x50] sm:$0xff]  ;;  %v351_v27 = vld [vmem:[%s2642_s2 + $0x20] sm:$0xff]  ;;  %v350_v29 = vld [vmem:[%s2642_s2 + $0x18] sm:$0xff]  ;;  %283 = vst.msk [vmem:[#allocation3] sm:$0xff] %vm282_vm1, %v2023_v4  ;;  %v509_v5 = vlaneseq }
  0x18   :  { %1642 = vmatprep.mubr.msk.f32.mxu0 %vm56_vm0, %v38_v7  ;;  %1670 = vmatpush3.msra.mxu1 %v359_v11  ;;  %v48_v28 = vld [vmem:[%s2640_s0 + $0x60] sm:$0xff]  ;;  %v49_v30 = vld [vmem:[%s2640_s0 + $0x68] sm:$0xff]  ;;  %v50_v31 = vld [vmem:[%s2640_s0 + $0x70] sm:$0xff]  ;;  %284 = vst.msk [vmem:[#allocation3 + $0x8] sm:$0xff] %vm282_vm1, %v2023_v4 }
  0x19   :  { %1671 = vmatprep.subr.mxu1 %v358_v13  ;;  %v51_v32 = vld [vmem:[%s2640_s0 + $0x78] sm:$0xff]  ;;  %v349_v33 = vld [vmem:[%s2642_s2 + $0x10] sm:$0xff]  ;;  %v348_v34 = vld [vmem:[%s2642_s2 + $0x8] sm:$0xff]  ;;  %285 = vst.msk [vmem:[#allocation3 + $0x10] sm:$0xff] %vm282_vm1, %v2023_v4  ;;  %v2198_v6 = vand.u32 127, %v509_v5  ;;  %s2026_s0 = smov [#allocation9]  }
  0x1a   :  { %1672 = vmatpush3.msra.mxu1 %v358_v13  ;;  %v347_v35 = vld [vmem:[%s2642_s2] sm:$0xff]  ;;  %286 = vst.msk [vmem:[#allocation3 + $0x18] sm:$0xff] %vm282_vm1, %v2023_v4  ;;  %287 = vst.msk [vmem:[#allocation3 + $0x20] sm:$0xff] %vm282_vm1, %v2023_v4  ;;  %v984_v5 = vld [vmem:[#allocation6 + $0x28] sm:$0xff]  ;;  %s1503_s2 = sshll.u32 %s2026_s0, 4  ;;  %s1504_s2 = int_to_ptr.vmem [resolvable:$true] %s1503_s2 }
  0x1b   :  { %1643 = vmatmul.mubr.msk.f32.gmra.mxu0 %vm56_vm0, %v39_v10  ;;  %1673 = vmatprep.subr.mxu1 %v357_v15  ;;  %288 = vst.msk [vmem:[#allocation3 + $0x28] sm:$0xff] %vm282_vm1, %v2023_v4  ;;  %289 = vst.msk [vmem:[#allocation3 + $0x30] sm:$0xff] %vm282_vm1, %v2023_v4  ;;  %vm513_vm2 = vcmp.lt.s32.totalorder %v2198_v6, 8  ;;  %vm1431_vm3 = vcmp.lt.s32.totalorder %v2198_v6, 64  ;;  %s1996_s14 = scalar_lea.vmem %s1504_s2, 2048  ;;  %p2001_p6 = scmp.lt.s32.totalorder %s1504_s2, %s1504_s2 }
  0x1c   :  { %1645 = vmatprep.mubr.msk.f32.mxu0 %vm56_vm0, %v40_v12  ;;  %1674 = vmatpush3.msra.mxu1 %v357_v15  ;;  %290 = vst.msk [vmem:[#allocation3 + $0x38] sm:$0xff] %vm282_vm1, %v2023_v4  ;;  %291 = vst.msk [vmem:[#allocation3 + $0x40] sm:$0xff] %vm282_vm1, %v2023_v4  ;;  %p1997_p5 = scmp.ne.s32.totalorder %s1504_s2, %s1996_s14  ;;  %p2002_p7 = scmp.lt.s32.totalorder %s1996_s14, %s1996_s14 }
  0x1d   :  { %1675 = vmatprep.subr.mxu1 %v356_v17  ;;  %292 = vst.msk [vmem:[#allocation3 + $0x48] sm:$0xff] %vm282_vm1, %v2023_v4  ;;  %293 = vst.msk [vmem:[#allocation3 + $0x50] sm:$0xff] %vm282_vm1, %v2023_v4 }
  0x1e   :  { %1676 = vmatpush3.msra.mxu1 %v356_v17  ;;  %294 = vst.msk [vmem:[#allocation3 + $0x58] sm:$0xff] %vm282_vm1, %v2023_v4  ;;  %295 = vst.msk [vmem:[#allocation3 + $0x60] sm:$0xff] %vm282_vm1, %v2023_v4  ;;  %p2003_p8 = por %p2002_p7, %p2001_p6 }
  0x1f   :  { %1646 = vmatmul.mubr.msk.f32.gmra.mxu0 %vm56_vm0, %v41_v14  ;;  %1677 = vmatprep.subr.mxu1 %v355_v19  ;;  %296 = vst.msk [vmem:[#allocation3 + $0x68] sm:$0xff] %vm282_vm1, %v2023_v4  ;;  %297 = vst.msk [vmem:[#allocation3 + $0x70] sm:$0xff] %vm282_vm1, %v2023_v4 }
  0x20   :  { %1648 = vmatprep.mubr.msk.f32.mxu0 %vm56_vm0, %v42_v16  ;;  %1678 = vmatpush3.msra.mxu1 %v355_v19  ;;  %298 = vst.msk [vmem:[#allocation3 + $0x78] sm:$0xff] %vm282_vm1, %v2023_v4  ;;  %p2004_p9 = pnand %p2003_p8, %p1997_p5 }
  0x21   :  { %1679 = vmatprep.subr.mxu1 %v354_v21 }
  0x22   :  { %1680 = vmatpush3.msra.mxu1 %v354_v21 }
  0x23   :  { %1649 = vmatmul.mubr.msk.f32.gmra.mxu0 %vm56_vm0, %v43_v18  ;;  %1681 = vmatprep.subr.mxu1 %v353_v23 }
  0x24   :  { %1651 = vmatprep.mubr.msk.f32.mxu0 %vm56_vm0, %v44_v20  ;;  %1682 = vmatpush3.msra.mxu1 %v353_v23  ;;  %v2024_v23 = vmov 0  }
  0x25   :  { %1683 = vmatprep.subr.mxu1 %v352_v25  ;;  %1814 = vset.pattern.permute.xlu0 %v2024_v23 }
  0x26   :  { %1684 = vmatpush3.msra.mxu1 %v352_v25  ;;  %1815 = vset.pattern.permute.xlu1 %v2024_v23 }
  0x27   :  { %1652 = vmatmul.mubr.msk.f32.gmra.mxu0 %vm56_vm0, %v45_v22  ;;  %1685 = vmatprep.subr.mxu1 %v351_v27 }
  0x28   :  { %1654 = vmatprep.mubr.msk.f32.mxu0 %vm56_vm0, %v46_v24  ;;  %1686 = vmatpush3.msra.mxu1 %v351_v27 }
  0x29   :  { %1687 = vmatprep.subr.mxu1 %v350_v29 }
  0x2a   :  { %1688 = vmatpush3.msra.mxu1 %v350_v29 }
  0x2b   :  { %1655 = vmatmul.mubr.msk.f32.gmra.mxu0 %vm56_vm0, %v47_v26  ;;  %1689 = vmatprep.subr.mxu1 %v349_v33 }
  0x2c   :  { %1657 = vmatprep.mubr.msk.f32.mxu0 %vm56_vm0, %v48_v28  ;;  %1690 = vmatpush3.msra.mxu1 %v349_v33 }
  0x2d   :  { %1691 = vmatprep.subr.mxu1 %v348_v34 }
  0x2e   :  { %1692 = vmatpush3.msra.mxu1 %v348_v34 }
  0x2f   :  { %1658 = vmatmul.mubr.msk.f32.gmra.mxu0 %vm56_vm0, %v49_v30  ;;  %1693 = vmatprep.subr.mxu1 %v347_v35 }
  0x30   :  { %1660 = vmatprep.mubr.msk.f32.mxu0 %vm56_vm0, %v50_v31  ;;  %1694 = vmatpush3.msra.mxu1 %v347_v35  ;;  %v2025_v35 = vmov 0.0  }
  0x31   :  { %299 = vst.msk [vmem:[#allocation4] sm:$0xff] %vm282_vm1, %v2025_v35  ;;  %300 = vst.msk [vmem:[#allocation4 + $0x8] sm:$0xff] %vm282_vm1, %v2025_v35 }
  0x32   :  { %301 = vst.msk [vmem:[#allocation4 + $0x10] sm:$0xff] %vm282_vm1, %v2025_v35  ;;  %302 = vst.msk [vmem:[#allocation4 + $0x18] sm:$0xff] %vm282_vm1, %v2025_v35 }
  0x33   :  { %1661 = vmatmul.mubr.msk.f32.gmra.mxu0 %vm56_vm0, %v51_v32  ;;  %303 = vst.msk [vmem:[#allocation4 + $0x20] sm:$0xff] %vm282_vm1, %v2025_v35  ;;  %304 = vst.msk [vmem:[#allocation4 + $0x28] sm:$0xff] %vm282_vm1, %v2025_v35 }
  0x34   :  { %305 = vst.msk [vmem:[#allocation4 + $0x30] sm:$0xff] %vm282_vm1, %v2025_v35  ;;  %306 = vst.msk [vmem:[#allocation4 + $0x38] sm:$0xff] %vm282_vm1, %v2025_v35 }
  0x35   :  { %307 = vst.msk [vmem:[#allocation4 + $0x40] sm:$0xff] %vm282_vm1, %v2025_v35  ;;  %308 = vst.msk [vmem:[#allocation4 + $0x48] sm:$0xff] %vm282_vm1, %v2025_v35 }
  0x36   :  { %309 = vst.msk [vmem:[#allocation4 + $0x50] sm:$0xff] %vm282_vm1, %v2025_v35  ;;  %310 = vst.msk [vmem:[#allocation4 + $0x58] sm:$0xff] %vm282_vm1, %v2025_v35 }
  0x37   :  { %311 = vst.msk [vmem:[#allocation4 + $0x60] sm:$0xff] %vm282_vm1, %v2025_v35  ;;  %312 = vst.msk [vmem:[#allocation4 + $0x68] sm:$0xff] %vm282_vm1, %v2025_v35 }
  0x38   :  { %313 = vst.msk [vmem:[#allocation4 + $0x70] sm:$0xff] %vm282_vm1, %v2025_v35  ;;  %314 = vst.msk [vmem:[#allocation4 + $0x78] sm:$0xff] %vm282_vm1, %v2025_v35 }
  0xd7   :  { %v1641_v36 = vpop.f32.mrf.mxu0 }
  0xd8   :  { %v251_v39 = vmul.f32 0.125, %v1641_v36 }
  0xd9   :  { %v171_v37 = vpop.f32.mrf.mxu0 }
  0xda   :  { %v250_v38 = vmul.f32 0.125, %v171_v37 }
  0xdb   :  { %v1644_v40 = vpop.f32.mrf.mxu0 }
  0xdc   :  { %1695 = vmatprep.mubr.f32.mxu1 %v250_v38  ;;  %v253_v41 = vmul.f32 0.125, %v1644_v40 }
  0xdd   :  { %v181_v42 = vpop.f32.mrf.mxu0  ;;  %1696 = vmatmul.mubr.f32.vlgmr.msra.gmra.mxu1 %v251_v39 }
  0xde   :  { %v252_v43 = vmul.f32 0.125, %v181_v42  ;;  %v993_v42 = vld [vmem:[#allocation6 + $0x70] sm:$0xff] }
  0xdf   :  { %v1647_v44 = vpop.f32.mrf.mxu0 }
  0xe0   :  { %1698 = vmatprep.mubr.f32.mxu1 %v252_v43  ;;  %v255_v45 = vmul.f32 0.125, %v1647_v44  ;;  %v992_v43 = vld [vmem:[#allocation6 + $0x68] sm:$0xff]  ;;  %v991_v44 = vld [vmem:[#allocation6 + $0x60] sm:$0xff] }
  0xe1   :  { %v191_v46 = vpop.f32.mrf.mxu0  ;;  %1699 = vmatmul.mubr.f32.gmra.mxu1 %v253_v41  ;;  %v994_v41 = vld [vmem:[#allocation6 + $0x78] sm:$0xff] }
  0xe2   :  { %v254_v47 = vmul.f32 0.125, %v191_v46  ;;  %1719 = vmatprep.subr.mxu0 %v994_v41  ;;  %1775 = vmatprep.subr.mxu1 %v994_v41  ;;  %v2297_v46 = vld [vmem:[#allocation3] sm:$0xff] }
  0xe3   :  { %v1650_v48 = vpop.f32.mrf.mxu0  ;;  %1720 = vmatpush3.msra.mxu0 %v994_v41  ;;  %1791 = vmatpush3.msra.mxu1 %v994_v41 }
  0xe4   :  { %1701 = vmatprep.mubr.f32.mxu1 %v254_v47  ;;  %v257_v49 = vmul.f32 0.125, %v1650_v48  ;;  %1721 = vmatprep.subr.mxu0 %v993_v42  ;;  %v989_v47 = vld [vmem:[#allocation6 + $0x50] sm:$0xff] }
  0xe5   :  { %v201_v50 = vpop.f32.mrf.mxu0  ;;  %1702 = vmatmul.mubr.f32.gmra.mxu1 %v255_v45  ;;  %1776 = vmatprep.subr.mxu1 %v993_v42  ;;  %v990_v45 = vld [vmem:[#allocation6 + $0x58] sm:$0xff] }
  0xe6   :  { %v256_v51 = vmul.f32 0.125, %v201_v50  ;;  %1722 = vmatpush3.msra.mxu0 %v993_v42  ;;  %1792 = vmatpush3.msra.mxu1 %v993_v42  ;;  %v988_v50 = vld [vmem:[#allocation6 + $0x48] sm:$0xff] }
  0xe7   :  { %v1653_v52 = vpop.f32.mrf.mxu0  ;;  %1723 = vmatprep.subr.mxu0 %v992_v43  ;;  %1777 = vmatprep.subr.mxu1 %v992_v43  ;;  %v980_v42 = vld [vmem:[#allocation6 + $0x8] sm:$0xff] }
  0xe8   :  { %1704 = vmatprep.mubr.f32.mxu1 %v256_v51  ;;  %v259_v53 = vmul.f32 0.125, %v1653_v52  ;;  %1724 = vmatpush3.msra.mxu0 %v992_v43 }
  0xe9   :  { %v211_v54 = vpop.f32.mrf.mxu0  ;;  %1705 = vmatmul.mubr.f32.gmra.mxu1 %v257_v49  ;;  %1725 = vmatprep.subr.mxu0 %v991_v44  ;;  %v2299_v49 = vld [vmem:[#allocation3 + $0x18] sm:$0xff] }
  0xea   :  { %v258_v55 = vmul.f32 0.125, %v211_v54  ;;  %1793 = vmatpush3.msra.mxu1 %v992_v43  ;;  %1726 = vmatpush3.msra.mxu0 %v991_v44  ;;  %v987_v54 = vld [vmem:[#allocation6 + $0x40] sm:$0xff] }
  0xeb   :  { %v1656_v56 = vpop.f32.mrf.mxu0  ;;  %1778 = vmatprep.subr.mxu1 %v991_v44  ;;  %1727 = vmatprep.subr.mxu0 %v990_v45 }
  0xec   :  { %1707 = vmatprep.mubr.f32.mxu1 %v258_v55  ;;  %v261_v57 = vmul.f32 0.125, %v1656_v56  ;;  %1794 = vmatpush3.msra.mxu1 %v991_v44 }
  0xed   :  { %v221_v58 = vpop.f32.mrf.mxu0  ;;  %1708 = vmatmul.mubr.f32.gmra.mxu1 %v259_v53  ;;  %1779 = vmatprep.subr.mxu1 %v990_v45  ;;  %v2304_v53 = vld [vmem:[#allocation3 + $0x8] sm:$0xff] }
  0xee   :  { %v260_v59 = vmul.f32 0.125, %v221_v58  ;;  %1728 = vmatpush3.msra.mxu0 %v990_v45  ;;  %1795 = vmatpush3.msra.mxu1 %v990_v45  ;;  %v2314_v58 = vld [vmem:[#allocation3 + $0x10] sm:$0xff] }
  0xef   :  { %v1659_v60 = vpop.f32.mrf.mxu0  ;;  %1729 = vmatprep.subr.mxu0 %v989_v47  ;;  %1780 = vmatprep.subr.mxu1 %v989_v47 }
  0xf0   :  { %1710 = vmatprep.mubr.f32.mxu1 %v260_v59  ;;  %v263_v61 = vmul.f32 0.125, %v1659_v60  ;;  %1730 = vmatpush3.msra.mxu0 %v989_v47  ;;  %v986_v59 = vld [vmem:[#allocation6 + $0x38] sm:$0xff] }
  0xf1   :  { %v231_v62 = vpop.f32.mrf.mxu0  ;;  %1711 = vmatmul.mubr.f32.gmra.mxu1 %v261_v57  ;;  %1731 = vmatprep.subr.mxu0 %v988_v50 }
  0xf2   :  { %v262_v63 = vmul.f32 0.125, %v231_v62  ;;  %1796 = vmatpush3.msra.mxu1 %v989_v47  ;;  %1732 = vmatpush3.msra.mxu0 %v988_v50  ;;  %v2380_v47 = vld [vmem:[#allocation3 + $0x50] sm:$0xff] }
  0xf3   :  { %v1662_v0 = vpop.f32.mrf.mxu0  ;;  %1781 = vmatprep.subr.mxu1 %v988_v50  ;;  %1733 = vmatprep.subr.mxu0 %v987_v54 }
  0xf4   :  { %1713 = vmatprep.mubr.f32.mxu1 %v262_v63  ;;  %v265_v1 = vmul.f32 0.125, %v1662_v0  ;;  %1797 = vmatpush3.msra.mxu1 %v988_v50  ;;  %v2323_v63 = vld [vmem:[#allocation3 + $0x20] sm:$0xff]  ;;  %v985_v0 = vld [vmem:[#allocation6 + $0x30] sm:$0xff] }
  0xf5   :  { %v241_v2 = vpop.f32.mrf.mxu0  ;;  %1714 = vmatmul.mubr.f32.gmra.mxu1 %v263_v61  ;;  %1734 = vmatpush3.msra.mxu0 %v987_v54 }
  0xf6   :  { %v264_v3 = vmul.f32 0.125, %v241_v2  ;;  %1782 = vmatprep.subr.mxu1 %v987_v54  ;;  %1735 = vmatprep.subr.mxu0 %v986_v59 }
  0xf7   :  { %1798 = vmatpush3.msra.mxu1 %v987_v54  ;;  %1736 = vmatpush3.msra.mxu0 %v986_v59  ;;  %v2390_v54 = vld [vmem:[#allocation3 + $0x58] sm:$0xff] }
  0xf8   :  { %1716 = vmatprep.mubr.f32.mxu1 %v264_v3  ;;  %1783 = vmatprep.subr.mxu1 %v986_v59  ;;  %v2333_v3 = vld [vmem:[#allocation3 + $0x28] sm:$0xff] }
  0xf9   :  { %1717 = vmatmul.mubr.f32.gmra.mxu1 %v265_v1  ;;  %1737 = vmatprep.subr.mxu0 %v985_v0 }
  0xfa   :  { %1738 = vmatpush3.msra.mxu0 %v985_v0  ;;  %1799 = vmatpush3.msra.mxu1 %v986_v59 }
  0xfb   :  { %1739 = vmatprep.subr.mxu0 %v984_v5  ;;  %1784 = vmatprep.subr.mxu1 %v985_v0 }
  0xfc   :  { %1740 = vmatpush3.msra.mxu0 %v984_v5  ;;  %1800 = vmatpush3.msra.mxu1 %v985_v0 }
  0xfd   :  { %1785 = vmatprep.subr.mxu1 %v984_v5 }
  0xfe   :  { %1801 = vmatpush3.msra.mxu1 %v984_v5 }
 0x19d   :  { %v1697_v7 = vpop.f32.mrf.mxu1 }
 0x19e   :  { %v2213_v13 = vsel %vm513_vm2, %v1697_v7, -inf }
 0x19f   :  { %v429_v8 = vpop.f32.mrf.mxu1 }
 0x1a0   :  { %v2203_v9 = vsel %vm513_vm2, %v429_v8, -inf }
 0x1a1   :  { %546 = vmax.xlane.f32.xlu0 %v2203_v9  ;;  %v1700_v10 = vpop.f32.mrf.mxu1 }
 0x1a2   :  { %v2208_v11 = vsel %vm513_vm2, %v1700_v10, -inf }
 0x1a3   :  { %552 = vmax.xlane.f32.xlu1 %v2208_v11  ;;  %v439_v12 = vpop.f32.mrf.mxu1 }
 0x1a4   :  { %v2217_v14 = vsel %vm513_vm2, %v439_v12, -inf  ;;  %v2342_v12 = vld [vmem:[#allocation3 + $0x30] sm:$0xff] }
 0x1a5   :  { %548 = vmax.xlane.f32.xlu0 %v2213_v13  ;;  %v1703_v15 = vpop.f32.mrf.mxu1 }
 0x1a6   :  { %v2223_v17 = vsel %vm513_vm2, %v1703_v15, -inf  ;;  %v983_v15 = vld [vmem:[#allocation6 + $0x20] sm:$0xff] }
 0x1a7   :  { %550 = vmax.xlane.f32.xlu1 %v2217_v14  ;;  %v449_v16 = vpop.f32.mrf.mxu1  ;;  %1741 = vmatprep.subr.mxu0 %v983_v15 }
 0x1a8   :  { %v2227_v18 = vsel %vm513_vm2, %v449_v16, -inf  ;;  %1742 = vmatpush3.msra.mxu0 %v983_v15  ;;  %1786 = vmatprep.subr.mxu1 %v983_v15 }
 0x1a9   :  { %v1706_v19 = vpop.f32.mrf.mxu1  ;;  %554 = vmax.xlane.f32.xlu0 %v2227_v18  ;;  %1802 = vmatpush3.msra.mxu1 %v983_v15  ;;  %v2410_v15 = vld [vmem:[#allocation3 + $0x78] sm:$0xff] }
 0x1aa   :  { %v2233_v21 = vsel %vm513_vm2, %v1706_v19, -inf }
 0x1ab   :  { %556 = vmax.xlane.f32.xlu1 %v2223_v17  ;;  %v459_v20 = vpop.f32.mrf.mxu1 }
 0x1ac   :  { %v2237_v22 = vsel %vm513_vm2, %v459_v20, -inf  ;;  %v2352_v20 = vld [vmem:[#allocation3 + $0x38] sm:$0xff] }
 0x1ad   :  { %v1709_v24 = vpop.f32.mrf.mxu1  ;;  %558 = vmax.xlane.f32.xlu0 %v2237_v22 }
 0x1ae   :  { %v2243_v26 = vsel %vm513_vm2, %v1709_v24, -inf  ;;  %v982_v24 = vld [vmem:[#allocation6 + $0x18] sm:$0xff] }
 0x1af   :  { %560 = vmax.xlane.f32.xlu1 %v2233_v21  ;;  %v469_v25 = vpop.f32.mrf.mxu1  ;;  %1743 = vmatprep.subr.mxu0 %v982_v24 }
 0x1b0   :  { %v2247_v27 = vsel %vm513_vm2, %v469_v25, -inf  ;;  %1744 = vmatpush3.msra.mxu0 %v982_v24  ;;  %1787 = vmatprep.subr.mxu1 %v982_v24 }
 0x1b1   :  { %v1712_v28 = vpop.f32.mrf.mxu1  ;;  %562 = vmax.xlane.f32.xlu0 %v2247_v27  ;;  %1803 = vmatpush3.msra.mxu1 %v982_v24 }
 0x1b2   :  { %v2253_v30 = vsel %vm513_vm2, %v1712_v28, -inf }
 0x1b3   :  { %564 = vmax.xlane.f32.xlu1 %v2243_v26  ;;  %v479_v29 = vpop.f32.mrf.mxu1 }
 0x1b4   :  { %v2257_v31 = vsel %vm513_vm2, %v479_v29, -inf }
 0x1b5   :  { %v1715_v32 = vpop.f32.mrf.mxu1  ;;  %566 = vmax.xlane.f32.xlu0 %v2257_v31 }
 0x1b6   :  { %v2288_v38 = vsel %vm513_vm2, %v1715_v32, -inf  ;;  %v2361_v32 = vld [vmem:[#allocation3 + $0x40] sm:$0xff] }
 0x1b7   :  { %568 = vmax.xlane.f32.xlu1 %v2253_v30  ;;  %v489_v33 = vpop.f32.mrf.mxu1 }
 0x1b8   :  { %v2263_v34 = vsel %vm513_vm2, %v489_v33, -inf  ;;  %v981_v33 = vld [vmem:[#allocation6 + $0x10] sm:$0xff] }
 0x1b9   :  { %v1718_v36 = vpop.f32.mrf.mxu1  ;;  %570 = vmax.xlane.f32.xlu0 %v2263_v34  ;;  %1745 = vmatprep.subr.mxu0 %v981_v33 }
 0x1ba   :  { %v2284_v37 = vsel %vm513_vm2, %v1718_v36, -inf  ;;  %1746 = vmatpush3.msra.mxu0 %v981_v33  ;;  %1788 = vmatprep.subr.mxu1 %v981_v33 }
 0x1bb   :  { %576 = vmax.xlane.f32.xlu1 %v2284_v37  ;;  %v499_v39 = vpop.f32.mrf.mxu1  ;;  %1747 = vmatprep.subr.mxu0 %v980_v42 }
 0x1bc   :  { %v2293_v40 = vsel %vm513_vm2, %v499_v39, -inf  ;;  %v2371_v39 = vld [vmem:[#allocation3 + $0x48] sm:$0xff]  ;;  %1748 = vmatpush3.msra.mxu0 %v980_v42  ;;  %1804 = vmatpush3.msra.mxu1 %v981_v33 }
 0x1bd   :  { %572 = vmax.xlane.f32.xlu0 %v2288_v38  ;;  %1789 = vmatprep.subr.mxu1 %v980_v42 }
 0x1be   :  { %1805 = vmatpush3.msra.mxu1 %v980_v42 }
 0x1bf   :  { %574 = vmax.xlane.f32.xlu1 %v2293_v40 }
 0x22a   :  { %v547_v48 = vpop.xlane.xlu0 %546 }
 0x22b   :  { %v2302_v51 = vmax.f32 %v2297_v46, %v547_v48  ;;  %v979_v48 = vld [vmem:[#allocation6] sm:$0xff] }
 0x22c   :  { %v553_v52 = vpop.xlane.xlu1 %552  ;;  %1749 = vmatprep.subr.mxu0 %v979_v48  ;;  %1790 = vmatprep.subr.mxu1 %v979_v48 }
 0x22d   :  { %v594_v55 = vsub.f32 %v2297_v46, %v2302_v51  ;;  %1172 = vst.msk [vmem:[#allocation3] sm:$0xff] %vm282_vm1, %v2302_v51  ;;  %v2311_v56 = vmax.f32 %v2299_v49, %v553_v52  ;;  %644 = vperm.xlu0 %1814, %v2302_v51   ;;  %1750 = vmatpush3.msra.mxu0 %v979_v48 }
 0x22e   :  { %v549_v57 = vpop.xlane.xlu0 %548  ;;  %1806 = vmatpush3.msra.mxu1 %v979_v48 }
 0x22f   :  { %1175 = vst.msk [vmem:[#allocation3 + $0x18] sm:$0xff] %vm282_vm1, %v2311_v56  ;;  %v2321_v61 = vmax.f32 %v2304_v53, %v549_v57 }
 0x230   :  { %v551_v62 = vpop.xlane.xlu1 %550 }
 0x231   :  { %v595_v1 = vsub.f32 %v2304_v53, %v2321_v61  ;;  %1173 = vst.msk [vmem:[#allocation3 + $0x8] sm:$0xff] %vm282_vm1, %v2321_v61  ;;  %v2330_v2 = vmax.f32 %v2314_v58, %v551_v62  ;;  %649 = vperm.xlu1 %1815, %v2321_v61  }
 0x232   :  { %v555_v4 = vpop.xlane.xlu0 %554 }
 0x233   :  { %1174 = vst.msk [vmem:[#allocation3 + $0x10] sm:$0xff] %vm282_vm1, %v2330_v2  ;;  %v2340_v8 = vmax.f32 %v2323_v63, %v555_v4  ;;  %v2400_v4 = vld [vmem:[#allocation3 + $0x60] sm:$0xff] }
 0x234   :  { %v557_v10 = vpop.xlane.xlu1 %556 }
 0x235   :  { %v2345_v16 = vmax.f32 %v2333_v3, %v557_v10  ;;  %659 = vperm.xlu1 %1815, %v2311_v56   ;;  %1176 = vst.msk [vmem:[#allocation3 + $0x20] sm:$0xff] %vm282_vm1, %v2340_v8  ;;  %v2647_v53 = vsub.f32 %v2323_v63, %v2340_v8 }
 0x236   :  { %v559_v23 = vpop.xlane.xlu0 %558 }
 0x237   :  { %1177 = vst.msk [vmem:[#allocation3 + $0x28] sm:$0xff] %vm282_vm1, %v2345_v16  ;;  %v2359_v28 = vmax.f32 %v2342_v12, %v559_v23  ;;  %v618_v61 = vmul.f32 1.442695, %v2647_v53  ;;  %v2648_v46 = vsub.f32 %v2333_v3, %v2345_v16 }
 0x238   :  { %v561_v29 = vpop.xlane.xlu1 %560 }
 0x239   :  { %v2364_v35 = vmax.f32 %v2352_v20, %v561_v29  ;;  %654 = vperm.xlu1 %1815, %v2330_v2   ;;  %1178 = vst.msk [vmem:[#allocation3 + $0x30] sm:$0xff] %vm282_vm1, %v2359_v28  ;;  %v620_v51 = vmul.f32 1.442695, %v2648_v46 }
 0x23a   :  { %v563_v41 = vpop.xlane.xlu0 %562 }
 0x23b   :  { %1179 = vst.msk [vmem:[#allocation3 + $0x38] sm:$0xff] %vm282_vm1, %v2364_v35  ;;  %v2378_v44 = vmax.f32 %v2361_v32, %v563_v41  ;;  %v2420_v41 = vld [vmem:[#allocation3 + $0x68] sm:$0xff] }
 0x23c   :  { %v565_v45 = vpop.xlane.xlu1 %564 }
 0x23d   :  { %v2383_v50 = vmax.f32 %v2371_v39, %v565_v45  ;;  %669 = vperm.xlu1 %1815, %v2345_v16   ;;  %1180 = vst.msk [vmem:[#allocation3 + $0x40] sm:$0xff] %vm282_vm1, %v2378_v44  ;;  %v2651_v63 = vsub.f32 %v2361_v32, %v2378_v44 }
 0x23e   :  { %v567_v57 = vpop.xlane.xlu0 %566 }
 0x23f   :  { %1181 = vst.msk [vmem:[#allocation3 + $0x48] sm:$0xff] %vm282_vm1, %v2383_v50  ;;  %689 = vperm.xlu0 %1814, %v2383_v50   ;;  %v2398_v62 = vmax.f32 %v2380_v47, %v567_v57  ;;  %v2430_v57 = vld [vmem:[#allocation3 + $0x70] sm:$0xff]  ;;  %v2652_v3 = vsub.f32 %v2371_v39, %v2383_v50 }
 0x240   :  { %v569_v0 = vpop.xlane.xlu1 %568 }
 0x241   :  { %v2403_v5 = vmax.f32 %v2390_v54, %v569_v0  ;;  %664 = vperm.xlu1 %1815, %v2340_v8   ;;  %1182 = vst.msk [vmem:[#allocation3 + $0x50] sm:$0xff] %vm282_vm1, %v2398_v62  ;;  %v628_v8 = vmul.f32 1.442695, %v2652_v3 }
 0x242   :  { %v571_v23 = vpop.xlane.xlu0 %570 }
 0x243   :  { %1183 = vst.msk [vmem:[#allocation3 + $0x58] sm:$0xff] %vm282_vm1, %v2403_v5  ;;  %699 = vperm.xlu0 %1814, %v2403_v5   ;;  %v2418_v29 = vmax.f32 %v2400_v4, %v571_v23  ;;  %v2654_v32 = vsub.f32 %v2390_v54, %v2403_v5 }
 0x244   :  { %v577_v33 = vpop.xlane.xlu1 %576 }
 0x245   :  { %v2423_v42 = vmax.f32 %v2410_v15, %v577_v33  ;;  %679 = vperm.xlu1 %1815, %v2364_v35   ;;  %1184 = vst.msk [vmem:[#allocation3 + $0x60] sm:$0xff] %vm282_vm1, %v2418_v29  ;;  %v2655_v39 = vsub.f32 %v2400_v4, %v2418_v29 }
 0x246   :  { %v573_v0 = vpop.xlane.xlu0 %572 }
 0x247   :  { %1187 = vst.msk [vmem:[#allocation3 + $0x78] sm:$0xff] %vm282_vm1, %v2423_v42  ;;  %v2437_v23 = vmax.f32 %v2420_v41, %v573_v0  ;;  %v634_v50 = vmul.f32 1.442695, %v2655_v39  ;;  %v2658_v4 = vsub.f32 %v2410_v15, %v2423_v42 }
 0x248   :  { %v575_v33 = vpop.xlane.xlu1 %574 }
 0x249   :  { %v2440_v24 = vmax.f32 %v2430_v57, %v575_v33  ;;  %674 = vperm.xlu1 %1815, %v2359_v28   ;;  %1185 = vst.msk [vmem:[#allocation3 + $0x68] sm:$0xff] %vm282_vm1, %v2437_v23 }
 0x24b   :  { %1186 = vst.msk [vmem:[#allocation3 + $0x70] sm:$0xff] %vm282_vm1, %v2440_v24  ;;  %714 = vperm.xlu0 %1814, %v2440_v24   ;;  %v2657_v54 = vsub.f32 %v2430_v57, %v2440_v24 }
 0x24d   :  { %684 = vperm.xlu1 %1815, %v2378_v44   ;;  %v638_v5 = vmul.f32 1.442695, %v2657_v54 }
 0x24f   :  { %719 = vperm.xlu0 %1814, %v2423_v42  }
 0x251   :  { %694 = vperm.xlu1 %1815, %v2398_v62  }
 0x255   :  { %704 = vperm.xlu1 %1815, %v2418_v29   ;;  %v640_v29 = vmul.f32 1.442695, %v2658_v4 }
 0x259   :  { %709 = vperm.xlu1 %1815, %v2437_v23  }
 0x2a8   :  { %v645_v0 = vpop.permute.xlu0 %644 }
 0x2a9   :  { %v722_v33 = vsub.f32 %v2203_v9, %v645_v0 }
 0x2ab   :  { %v738_v45 = vmul.f32 1.442695, %v722_v33 }
 0x2ac   :  { %v650_v48 = vpop.permute.xlu1 %649 }
 0x2ad   :  { %1816 = vpow2.f32 %v738_v45  ;;  %v723_v10 = vsub.f32 %v2213_v13, %v650_v48 }
 0x2af   :  { %v740_v59 = vmul.f32 1.442695, %v723_v10 }
 0x2b0   :  { %v660_v52 = vpop.permute.xlu1 %659 }
 0x2b1   :  { %1818 = vpow2.f32 %v740_v59  ;;  %v725_v43 = vsub.f32 %v2208_v11, %v660_v52 }
 0x2b3   :  { %v744_v36 = vmul.f32 1.442695, %v725_v43 }
 0x2b4   :  { %v655_v25 = vpop.permute.xlu1 %654 }
 0x2b5   :  { %1820 = vpow2.f32 %v744_v36  ;;  %v724_v19 = vsub.f32 %v2217_v14, %v655_v25 }
 0x2b7   :  { %v742_v60 = vmul.f32 1.442695, %v724_v19 }
 0x2b8   :  { %v670_v7 = vpop.permute.xlu1 %669 }
 0x2b9   :  { %1822 = vpow2.f32 %v742_v60  ;;  %v727_v9 = vsub.f32 %v2223_v17, %v670_v7 }
 0x2ba   :  { %v1817_v0 = vpop.eup %1816  ;;  %v690_v45 = vpop.permute.xlu0 %689 }
 0x2bb   :  { %v748_v33 = vmul.f32 1.442695, %v727_v9  ;;  %1751 = vmatprep.mubr.f32.mxu0 %v1817_v0  ;;  %802 = vadd.xlane.f32.xlu1 %v1817_v0  ;;  %v731_v14 = vsub.f32 %v2243_v26, %v690_v45 }
 0x2bc   :  { %v665_v13 = vpop.permute.xlu1 %664 }
 0x2bd   :  { %1824 = vpow2.f32 %v748_v33  ;;  %v726_v59 = vsub.f32 %v2227_v18, %v665_v13  ;;  %v756_v36 = vmul.f32 1.442695, %v731_v14 }
 0x2be   :  { %v1819_v11 = vpop.eup %1818  ;;  %v700_v60 = vpop.permute.xlu0 %699 }
 0x2bf   :  { %v746_v43 = vmul.f32 1.442695, %v726_v59  ;;  %804 = vadd.xlane.f32.xlu0 %v1819_v11  ;;  %1752 = vmatmul.mubr.f32.vlgmr.msra.gmra.mxu0 %v1819_v11  ;;  %v733_v52 = vsub.f32 %v2253_v30, %v700_v60 }
 0x2c0   :  { %v680_v19 = vpop.permute.xlu1 %679 }
 0x2c1   :  { %1826 = vpow2.f32 %v746_v43  ;;  %v729_v17 = vsub.f32 %v2233_v21, %v680_v19  ;;  %v760_v33 = vmul.f32 1.442695, %v733_v52 }
 0x2c2   :  { %v1821_v7 = vpop.eup %1820 }
 0x2c3   :  { %v752_v25 = vmul.f32 1.442695, %v729_v17  ;;  %808 = vadd.xlane.f32.xlu1 %v1821_v7 }
 0x2c4   :  { %v675_v10 = vpop.permute.xlu1 %674 }
 0x2c5   :  { %1828 = vpow2.f32 %v752_v25  ;;  %v728_v18 = vsub.f32 %v2237_v22, %v675_v10 }
 0x2c6   :  { %v1823_v48 = vpop.eup %1822  ;;  %v715_v9 = vpop.permute.xlu0 %714  ;;  %1830 = vpow2.f32 %v756_v36 }
 0x2c7   :  { %v750_v0 = vmul.f32 1.442695, %v728_v18  ;;  %v736_v26 = vsub.f32 %v2293_v40, %v715_v9  ;;  %806 = vadd.xlane.f32.xlu0 %v1823_v48  ;;  %1754 = vmatprep.mubr.f32.mxu0 %v1823_v48 }
 0x2c8   :  { %1755 = vmatmul.mubr.f32.gmra.mxu0 %v1821_v7  ;;  %v685_v21 = vpop.permute.xlu1 %684 }
 0x2c9   :  { %1832 = vpow2.f32 %v750_v0  ;;  %v766_v45 = vmul.f32 1.442695, %v736_v26  ;;  %v730_v13 = vsub.f32 %v2247_v27, %v685_v21  ;;  %v610_v21 = vmul.f32 1.442695, %v594_v55 }
 0x2ca   :  { %v1825_v30 = vpop.eup %1824  ;;  %v720_v59 = vpop.permute.xlu0 %719  ;;  %v2649_v55 = vsub.f32 %v2342_v12, %v2359_v28  ;;  %v2653_v12 = vsub.f32 %v2380_v47, %v2398_v62  ;;  %v2656_v47 = vsub.f32 %v2420_v41, %v2437_v23 }
 0x2cb   :  { %1834 = vpow2.f32 %v766_v45  ;;  %v754_v11 = vmul.f32 1.442695, %v730_v13  ;;  %v737_v22 = vsub.f32 %v2284_v37, %v720_v59  ;;  %812 = vadd.xlane.f32.xlu1 %v1825_v30  ;;  %v2645_v45 = vsub.f32 %v2314_v58, %v2330_v2 }
 0x2cc   :  { %1836 = vpow2.f32 %v760_v33  ;;  %v695_v43 = vpop.permute.xlu1 %694  ;;  %v612_v33 = vmul.f32 1.442695, %v595_v1  ;;  %v622_v58 = vmul.f32 1.442695, %v2649_v55  ;;  %v626_v1 = vmul.f32 1.442695, %v2651_v63 }
 0x2cd   :  { %1838 = vpow2.f32 %v754_v11  ;;  %v768_v40 = vmul.f32 1.442695, %v737_v22  ;;  %v732_v14 = vsub.f32 %v2257_v31, %v695_v43  ;;  %v614_v13 = vmul.f32 1.442695, %v2645_v45 }
 0x2ce   :  { %v1827_v19 = vpop.eup %1826  ;;  %v636_v62 = vmul.f32 1.442695, %v2656_v47 }
 0x2cf   :  { %1840 = vpow2.f32 %v768_v40  ;;  %v758_v60 = vmul.f32 1.442695, %v732_v14  ;;  %810 = vadd.xlane.f32.xlu0 %v1827_v19  ;;  %1757 = vmatprep.mubr.f32.mxu0 %v1827_v19 }
 0x2d0   :  { %1758 = vmatmul.mubr.f32.gmra.mxu0 %v1825_v30  ;;  %v705_v27 = vpop.permute.xlu1 %704  ;;  %v2646_v30 = vsub.f32 %v2299_v49, %v2311_v56  ;;  %v2650_v49 = vsub.f32 %v2352_v20, %v2364_v35  ;;  %v630_v20 = vmul.f32 1.442695, %v2653_v12  ;;  %v632_v35 = vmul.f32 1.442695, %v2654_v32 }
 0x2d1   :  { %1842 = vpow2.f32 %v758_v60  ;;  %v734_v17 = vsub.f32 %v2263_v34, %v705_v27  ;;  %v770_v60 = vld [vmem:[#allocation4] sm:$0xff] }
 0x2d2   :  { %v1829_v7 = vpop.eup %1828  ;;  %v616_v59 = vmul.f32 1.442695, %v2646_v30  ;;  %v624_v56 = vmul.f32 1.442695, %v2650_v49  ;;  %v774_v30 = vld [vmem:[#allocation4 + $0x20] sm:$0xff] }
 0x2d3   :  { %v762_v25 = vmul.f32 1.442695, %v734_v17  ;;  %816 = vadd.xlane.f32.xlu1 %v1829_v7  ;;  %v1831_v36 = vpop.eup %1830 }
 0x2d4   :  { %v710_v37 = vpop.permute.xlu1 %709 }
 0x2d5   :  { %1844 = vpow2.f32 %v762_v25  ;;  %v735_v52 = vsub.f32 %v2288_v38, %v710_v37 }
 0x2d6   :  { %v1833_v10 = vpop.eup %1832 }
 0x2d7   :  { %v764_v31 = vmul.f32 1.442695, %v735_v52  ;;  %820 = vadd.xlane.f32.xlu1 %v1831_v36  ;;  %814 = vadd.xlane.f32.xlu0 %v1833_v10  ;;  %v773_v52 = vld [vmem:[#allocation4 + $0x18] sm:$0xff] }
 0x2d8   :  { %v1835_v18 = vpop.eup %1834  ;;  %1760 = vmatprep.mubr.f32.mxu0 %v1833_v10 }
 0x2d9   :  { %v1837_v48 = vpop.eup %1836  ;;  %1846 = vpow2.f32 %v764_v31  ;;  %1761 = vmatmul.mubr.f32.gmra.mxu0 %v1829_v7  ;;  %1772 = vmatprep.mubr.f32.mxu1 %v1835_v18  ;;  %v771_v7 = vld [vmem:[#allocation4 + $0x8] sm:$0xff] }
 0x2da   :  { %v1839_v9 = vpop.eup %1838  ;;  %1848 = vpow2.f32 %v612_v33 }
 0x2db   :  { %824 = vadd.xlane.f32.xlu1 %v1837_v48  ;;  %818 = vadd.xlane.f32.xlu0 %v1839_v9  ;;  %1850 = vpow2.f32 %v610_v21 }
 0x2dc   :  { %v1841_v34 = vpop.eup %1840  ;;  %1763 = vmatprep.mubr.f32.mxu0 %v1839_v9  ;;  %1852 = vpow2.f32 %v614_v13 }
 0x2dd   :  { %1764 = vmatmul.mubr.f32.gmra.mxu0 %v1831_v36  ;;  %1773 = vmatmul.mubr.f32.vlgmr.msra.gmra.mxu1 %v1841_v34  ;;  %1854 = vpow2.f32 %v616_v59 }
 0x2de   :  { %v1843_v0 = vpop.eup %1842  ;;  %1856 = vpow2.f32 %v618_v61 }
 0x2df   :  { %822 = vadd.xlane.f32.xlu0 %v1843_v0  ;;  %1766 = vmatprep.mubr.f32.mxu0 %v1843_v0  ;;  %1858 = vpow2.f32 %v620_v51  ;;  %v777_v51 = vld [vmem:[#allocation4 + $0x38] sm:$0xff] }
 0x2e0   :  { %1860 = vpow2.f32 %v622_v58 }
 0x2e1   :  { %1767 = vmatmul.mubr.f32.gmra.mxu0 %v1837_v48  ;;  %1862 = vpow2.f32 %v624_v56  ;;  %v772_v48 = vld [vmem:[#allocation4 + $0x10] sm:$0xff] }
 0x2e2   :  { %v1845_v38 = vpop.eup %1844  ;;  %1864 = vpow2.f32 %v626_v1  ;;  %v776_v1 = vld [vmem:[#allocation4 + $0x30] sm:$0xff] }
 0x2e3   :  { %826 = vadd.xlane.f32.xlu0 %v1845_v38  ;;  %1769 = vmatprep.mubr.f32.mxu0 %v1845_v38  ;;  %1866 = vpow2.f32 %v628_v8 }
 0x2e4   :  { %1868 = vpow2.f32 %v630_v20 }
 0x2e5   :  { %1870 = vpow2.f32 %v632_v35  ;;  %v778_v35 = vld [vmem:[#allocation4 + $0x40] sm:$0xff] }
 0x2e6   :  { %v1847_v26 = vpop.eup %1846  ;;  %1872 = vpow2.f32 %v634_v50 }
 0x2e7   :  { %830 = vadd.xlane.f32.xlu0 %v1835_v18  ;;  %828 = vadd.xlane.f32.xlu1 %v1847_v26  ;;  %v1849_v2 = vpop.eup %1848  ;;  %1874 = vpow2.f32 %v636_v62 }
 0x2e8   :  { %1770 = vmatmul.mubr.f32.gmra.mxu0 %v1847_v26  ;;  %v1851_v16 = vpop.eup %1850  ;;  %1876 = vpow2.f32 %v638_v5  ;;  %v787_v37 = vmul.f32 %v1849_v2, %v771_v7  ;;  %v775_v26 = vld [vmem:[#allocation4 + $0x28] sm:$0xff] }
 0x2e9   :  { %v1853_v28 = vpop.eup %1852  ;;  %1878 = vpow2.f32 %v640_v29  ;;  %v786_v27 = vmul.f32 %v1851_v16, %v770_v60 }
 0x2ea   :  { %v1855_v44 = vpop.eup %1854  ;;  %v788_v0 = vmul.f32 %v1853_v28, %v772_v48 }
 0x2eb   :  { %832 = vadd.xlane.f32.xlu1 %v1841_v34  ;;  %v2512_v11 = vpop.eup %1856  ;;  %v789_v31 = vmul.f32 %v1855_v44, %v773_v52  ;;  %v784_v52 = vld [vmem:[#allocation4 + $0x70] sm:$0xff] }
 0x2ec   :  { %v1859_v22 = vpop.eup %1858  ;;  %v790_v61 = vmul.f32 %v2512_v11, %v774_v30 }
 0x2ed   :  { %v2521_v43 = vpop.eup %1860  ;;  %v791_v45 = vmul.f32 %v1859_v22, %v775_v26 }
 0x2ee   :  { %v1863_v40 = vpop.eup %1862 }
 0x2ef   :  { %v2527_v41 = vpop.eup %1864  ;;  %v793_v49 = vmul.f32 %v1863_v40, %v777_v51 }
 0x2f0   :  { %v2529_v23 = vpop.eup %1866  ;;  %v794_v47 = vmul.f32 %v2527_v41, %v778_v35 }
 0x2f1   :  { %v2533_v24 = vpop.eup %1868 }
 0x2f2   :  { %v2535_v57 = vpop.eup %1870 }
 0x2f3   :  { %v2539_v15 = vpop.eup %1872 }
 0x2f4   :  { %v2541_v42 = vpop.eup %1874 }
 0x2f5   :  { %v2545_v14 = vpop.eup %1876 }
 0x2f6   :  { %v2547_v19 = vpop.eup %1878  ;;  %v800_v48 = vmul.f32 %v2545_v14, %v784_v52 }
 0x2fc   :  { %890 = vperm.xlu1 %1815, %v1849_v2   ;;  %v779_v2 = vld [vmem:[#allocation4 + $0x48] sm:$0xff] }
 0x2fd   :  { %885 = vperm.xlu0 %1814, %v1851_v16   ;;  %v792_v16 = vmul.f32 %v2521_v43, %v776_v1  ;;  %v795_v12 = vmul.f32 %v2529_v23, %v779_v2 }
 0x300   :  { %895 = vperm.xlu1 %1815, %v1853_v28  }
 0x301   :  { %900 = vperm.xlu0 %1814, %v1855_v44   ;;  %v781_v44 = vld [vmem:[#allocation4 + $0x58] sm:$0xff] }
 0x302   :  { %v797_v62 = vmul.f32 %v2535_v57, %v781_v44 }
 0x304   :  { %905 = vperm.xlu1 %1815, %v2512_v11  }
 0x305   :  { %910 = vperm.xlu0 %1814, %v1859_v22  }
 0x308   :  { %915 = vperm.xlu1 %1815, %v2521_v43   ;;  %v780_v43 = vld [vmem:[#allocation4 + $0x50] sm:$0xff] }
 0x309   :  { %920 = vperm.xlu0 %1814, %v1863_v40  }
 0x30c   :  { %925 = vperm.xlu1 %1815, %v2527_v41  }
 0x30d   :  { %930 = vperm.xlu0 %1814, %v2529_v23   ;;  %v796_v23 = vmul.f32 %v2533_v24, %v780_v43 }
 0x310   :  { %935 = vperm.xlu1 %1815, %v2533_v24  }
 0x311   :  { %940 = vperm.xlu0 %1814, %v2535_v57  }
 0x314   :  { %945 = vperm.xlu1 %1815, %v2539_v15  }
 0x315   :  { %950 = vperm.xlu0 %1814, %v2541_v42  }
 0x318   :  { %955 = vperm.xlu1 %1815, %v2545_v14  }
 0x319   :  { %960 = vperm.xlu0 %1814, %v2547_v19  }
 0x344   :  { %v803_v17 = vpop.xlane.xlu1 %802 }
 0x345   :  { %v834_v25 = vadd.f32 %v803_v17, %v786_v27  ;;  %v782_v27 = vld [vmem:[#allocation4 + $0x60] sm:$0xff] }
 0x347   :  { %851 = vst.msk [vmem:[#allocation4] sm:$0xff] %vm282_vm1, %v834_v25  ;;  %v798_v25 = vmul.f32 %v2539_v15, %v782_v27 }
 0x348   :  { %v805_v36 = vpop.xlane.xlu0 %804 }
 0x349   :  { %v835_v10 = vadd.f32 %v805_v36, %v787_v37 }
 0x34b   :  { %852 = vst.msk [vmem:[#allocation4 + $0x8] sm:$0xff] %vm282_vm1, %v835_v10  ;;  %v783_v10 = vld [vmem:[#allocation4 + $0x68] sm:$0xff] }
 0x34c   :  { %v809_v18 = vpop.xlane.xlu1 %808 }
 0x34d   :  { %v837_v9 = vadd.f32 %v809_v18, %v789_v31 }
 0x34e   :  { %v1207_v34 = vld [vmem:[#allocation4] sm:$0xff] }
 0x34f   :  { %854 = vst.msk [vmem:[#allocation4 + $0x18] sm:$0xff] %vm282_vm1, %v837_v9  ;;  %1880 = vrcp.f32 %v1207_v34  ;;  %v799_v9 = vmul.f32 %v2541_v42, %v783_v10 }
 0x350   :  { %v807_v38 = vpop.xlane.xlu0 %806 }
 0x351   :  { %v836_v33 = vadd.f32 %v807_v38, %v788_v0  ;;  %v785_v38 = vld [vmem:[#allocation4 + $0x78] sm:$0xff] }
 0x352   :  { %v1208_v21 = vld [vmem:[#allocation4 + $0x8] sm:$0xff] }
 0x353   :  { %853 = vst.msk [vmem:[#allocation4 + $0x10] sm:$0xff] %vm282_vm1, %v836_v33  ;;  %1882 = vrcp.f32 %v1208_v21 }
 0x354   :  { %v813_v13 = vpop.xlane.xlu1 %812 }
 0x355   :  { %v839_v59 = vadd.f32 %v813_v13, %v791_v45  ;;  %v801_v45 = vmul.f32 %v2547_v19, %v785_v38 }
 0x356   :  { %v1210_v53 = vld [vmem:[#allocation4 + $0x18] sm:$0xff] }
 0x357   :  { %856 = vst.msk [vmem:[#allocation4 + $0x28] sm:$0xff] %vm282_vm1, %v839_v59  ;;  %1884 = vrcp.f32 %v1210_v53 }
 0x358   :  { %v811_v46 = vpop.xlane.xlu0 %810 }
 0x359   :  { %v838_v55 = vadd.f32 %v811_v46, %v790_v61 }
 0x35a   :  { %v1209_v58 = vld [vmem:[#allocation4 + $0x10] sm:$0xff] }
 0x35b   :  { %855 = vst.msk [vmem:[#allocation4 + $0x20] sm:$0xff] %vm282_vm1, %v838_v55  ;;  %1886 = vrcp.f32 %v1209_v58 }
 0x35c   :  { %v1881_v56 = vpop.eup %1880  ;;  %v817_v63 = vpop.xlane.xlu1 %816 }
 0x35d   :  { %v841_v3 = vadd.f32 %v817_v63, %v793_v49  ;;  %1241 = vperm.xlu1 %1815, %v1881_v56  }
 0x35e   :  { %v1212_v8 = vld [vmem:[#allocation4 + $0x28] sm:$0xff] }
 0x35f   :  { %858 = vst.msk [vmem:[#allocation4 + $0x38] sm:$0xff] %vm282_vm1, %v841_v3  ;;  %1888 = vrcp.f32 %v1212_v8 }
 0x360   :  { %v1883_v20 = vpop.eup %1882  ;;  %v815_v28 = vpop.xlane.xlu0 %814 }
 0x361   :  { %v821_v32 = vpop.xlane.xlu1 %820  ;;  %v840_v39 = vadd.f32 %v815_v28, %v792_v16  ;;  %1246 = vperm.xlu0 %1814, %v1883_v20  }
 0x362   :  { %v843_v50 = vadd.f32 %v821_v32, %v795_v12  ;;  %v1211_v11 = vld [vmem:[#allocation4 + $0x20] sm:$0xff] }
 0x363   :  { %857 = vst.msk [vmem:[#allocation4 + $0x30] sm:$0xff] %vm282_vm1, %v840_v39  ;;  %1890 = vrcp.f32 %v1211_v11 }
 0x364   :  { %860 = vst.msk [vmem:[#allocation4 + $0x48] sm:$0xff] %vm282_vm1, %v843_v50  ;;  %v1885_v22 = vpop.eup %1884  ;;  %v819_v54 = vpop.xlane.xlu0 %818 }
 0x365   :  { %v825_v5 = vpop.xlane.xlu1 %824  ;;  %v842_v4 = vadd.f32 %v819_v54, %v794_v47  ;;  %1256 = vperm.xlu0 %1814, %v1885_v22  }
 0x366   :  { %v845_v29 = vadd.f32 %v825_v5, %v797_v62  ;;  %v1214_v40 = vld [vmem:[#allocation4 + $0x38] sm:$0xff] }
 0x367   :  { %859 = vst.msk [vmem:[#allocation4 + $0x40] sm:$0xff] %vm282_vm1, %v842_v4  ;;  %1892 = vrcp.f32 %v1214_v40 }
 0x368   :  { %862 = vst.msk [vmem:[#allocation4 + $0x58] sm:$0xff] %vm282_vm1, %v845_v29  ;;  %v1887_v60 = vpop.eup %1886  ;;  %v823_v41 = vpop.xlane.xlu0 %822 }
 0x369   :  { %v844_v57 = vadd.f32 %v823_v41, %v796_v23  ;;  %1251 = vperm.xlu1 %1815, %v1887_v60  }
 0x36a   :  { %v1213_v17 = vld [vmem:[#allocation4 + $0x30] sm:$0xff] }
 0x36b   :  { %v1216_v7 = vld [vmem:[#allocation4 + $0x48] sm:$0xff]  ;;  %861 = vst.msk [vmem:[#allocation4 + $0x50] sm:$0xff] %vm282_vm1, %v844_v57  ;;  %1894 = vrcp.f32 %v1213_v17 }
 0x36c   :  { %v1889_v37 = vpop.eup %1888  ;;  %v827_v36 = vpop.xlane.xlu0 %826  ;;  %1896 = vrcp.f32 %v1216_v7 }
 0x36d   :  { %v846_v31 = vadd.f32 %v827_v36, %v798_v25  ;;  %1266 = vperm.xlu0 %1814, %v1889_v37  }
 0x36e   :  { %v1215_v24 = vld [vmem:[#allocation4 + $0x40] sm:$0xff] }
 0x36f   :  { %v1218_v18 = vld [vmem:[#allocation4 + $0x58] sm:$0xff]  ;;  %863 = vst.msk [vmem:[#allocation4 + $0x60] sm:$0xff] %vm282_vm1, %v846_v31  ;;  %1898 = vrcp.f32 %v1215_v24 }
 0x370   :  { %v1891_v34 = vpop.eup %1890  ;;  %v831_v0 = vpop.xlane.xlu0 %830  ;;  %1900 = vrcp.f32 %v1218_v18 }
 0x371   :  { %v829_v15 = vpop.xlane.xlu1 %828  ;;  %v848_v26 = vadd.f32 %v831_v0, %v800_v48  ;;  %1261 = vperm.xlu1 %1815, %v1891_v34  }
 0x372   :  { %v847_v33 = vadd.f32 %v829_v15, %v799_v9  ;;  %v1217_v21 = vld [vmem:[#allocation4 + $0x50] sm:$0xff] }
 0x373   :  { %865 = vst.msk [vmem:[#allocation4 + $0x70] sm:$0xff] %vm282_vm1, %v848_v26  ;;  %1902 = vrcp.f32 %v1217_v21 }
 0x374   :  { %864 = vst.msk [vmem:[#allocation4 + $0x68] sm:$0xff] %vm282_vm1, %v847_v33  ;;  %v1893_v14 = vpop.eup %1892 }
 0x375   :  { %v833_v13 = vpop.xlane.xlu1 %832  ;;  %1276 = vperm.xlu0 %1814, %v1893_v14  }
 0x376   :  { %v849_v42 = vadd.f32 %v833_v13, %v801_v45  ;;  %v1219_v30 = vld [vmem:[#allocation4 + $0x60] sm:$0xff] }
 0x377   :  { %1904 = vrcp.f32 %v1219_v30 }
 0x378   :  { %866 = vst.msk [vmem:[#allocation4 + $0x78] sm:$0xff] %vm282_vm1, %v849_v42  ;;  %v1895_v59 = vpop.eup %1894  ;;  %v886_v3 = vpop.permute.xlu0 %885 }
 0x379   :  { %v1897_v53 = vpop.eup %1896  ;;  %1271 = vperm.xlu1 %1815, %v1895_v59   ;;  %v891_v2 = vpop.permute.xlu1 %890  ;;  %v963_v5 = vmul.f32 0.0, %v886_v3 }
 0x37a   :  { %1286 = vperm.xlu0 %1814, %v1897_v53   ;;  %v1221_v61 = vld [vmem:[#allocation4 + $0x70] sm:$0xff]  ;;  %v964_v23 = vmul.f32 0.0, %v891_v2 }
 0x37b   :  { %v1220_v46 = vld [vmem:[#allocation4 + $0x68] sm:$0xff]  ;;  %1906 = vrcp.f32 %v1221_v61 }
 0x37c   :  { %v1899_v51 = vpop.eup %1898  ;;  %1908 = vrcp.f32 %v1220_v46  ;;  %v901_v16 = vpop.permute.xlu0 %900 }
 0x37d   :  { %v1901_v55 = vpop.eup %1900  ;;  %1281 = vperm.xlu1 %1815, %v1899_v51   ;;  %v896_v8 = vpop.permute.xlu1 %895  ;;  %v966_v25 = vmul.f32 0.0, %v901_v16 }
 0x37e   :  { %1296 = vperm.xlu0 %1814, %v1901_v55   ;;  %v965_v24 = vmul.f32 0.0, %v896_v8 }
 0x37f   :  { %v1222_v19 = vld [vmem:[#allocation4 + $0x78] sm:$0xff]  ;;  %v1753_v47 = vpop.f32.mrf.mxu0 }
 0x380   :  { %1910 = vrcp.f32 %v1222_v19  ;;  %v1903_v58 = vpop.eup %1902  ;;  %v911_v20 = vpop.permute.xlu0 %910  ;;  %v1141_v27 = vadd.f32 %v1753_v47, %v964_v23 }
 0x381   :  { %1291 = vperm.xlu1 %1815, %v1903_v58   ;;  %v906_v12 = vpop.permute.xlu1 %905  ;;  %v1061_v22 = vpop.f32.mrf.mxu0  ;;  %v968_v15 = vmul.f32 0.0, %v911_v20 }
 0x382   :  { %v1140_v4 = vadd.f32 %v1061_v22, %v963_v5  ;;  %v967_v14 = vmul.f32 0.0, %v906_v12 }
 0x384   :  { %v1905_v49 = vpop.eup %1904  ;;  %v921_v32 = vpop.permute.xlu0 %920 }
 0x385   :  { %1301 = vperm.xlu1 %1815, %v1905_v49   ;;  %v916_v28 = vpop.permute.xlu1 %915  ;;  %v970_v51 = vmul.f32 0.0, %v921_v32 }
 0x386   :  { %v969_v2 = vmul.f32 0.0, %v916_v28 }
 0x388   :  { %v1907_v56 = vpop.eup %1906  ;;  %v2579_v44 = vpop.permute.xlu0 %930 }
 0x389   :  { %v1909_v63 = vpop.eup %1908  ;;  %1311 = vperm.xlu1 %1815, %v1907_v56   ;;  %v2577_v35 = vpop.permute.xlu1 %925  ;;  %v972_v16 = vmul.f32 0.0, %v2579_v44 }
 0x38a   :  { %1306 = vperm.xlu0 %1814, %v1909_v63   ;;  %v1756_v43 = vpop.f32.mrf.mxu0 }
 0x38b   :  { %v1143_v36 = vadd.f32 %v1756_v43, %v966_v25  ;;  %v971_v43 = vmul.f32 0.0, %v2577_v35 }
 0x38c   :  { %v2583_v50 = vpop.permute.xlu0 %940  ;;  %v1071_v41 = vpop.f32.mrf.mxu0 }
 0x38d   :  { %v1911_v1 = vpop.eup %1910  ;;  %v2581_v39 = vpop.permute.xlu1 %935  ;;  %v1142_v9 = vadd.f32 %v1071_v41, %v965_v24  ;;  %v974_v28 = vmul.f32 0.0, %v2583_v50 }
 0x38e   :  { %1316 = vperm.xlu0 %1814, %v1911_v1   ;;  %v973_v35 = vmul.f32 0.0, %v2581_v39 }
 0x390   :  { %v2587_v62 = vpop.permute.xlu0 %950  ;;  %v1759_v17 = vpop.f32.mrf.mxu0 }
 0x391   :  { %v2585_v11 = vpop.permute.xlu1 %945  ;;  %v1145_v33 = vadd.f32 %v1759_v17, %v968_v15 }
 0x392   :  { %v1081_v10 = vpop.f32.mrf.mxu0  ;;  %v975_v39 = vmul.f32 0.0, %v2585_v11 }
 0x393   :  { %v1144_v59 = vadd.f32 %v1081_v10, %v967_v14 }
 0x394   :  { %v2591_v29 = vpop.permute.xlu0 %960 }
 0x395   :  { %v2589_v54 = vpop.permute.xlu1 %955 }
 0x399   :  { %v1762_v48 = vpop.f32.mrf.mxu0 }
 0x39a   :  { %v1147_v49 = vadd.f32 %v1762_v48, %v970_v51 }
 0x39b   :  { %v1091_v26 = vpop.f32.mrf.mxu0 }
 0x39c   :  { %v1146_v20 = vadd.f32 %v1091_v26, %v969_v2 }
 0x39d   :  { %v1765_v30 = vpop.f32.mrf.mxu0  ;;  %v1774_v24 = vpop.f32.mrf.mxu1 }
 0x39e   :  { %v1149_v22 = vadd.f32 %v1765_v30, %v972_v16 }
 0x39f   :  { %v1101_v58 = vpop.f32.mrf.mxu0 }
 0x3a1   :  { %v1768_v12 = vpop.f32.mrf.mxu0 }
 0x3a2   :  { %v1151_v17 = vadd.f32 %v1768_v12, %v974_v28 }
 0x3d8   :  { %v1242_v40 = vpop.permute.xlu1 %1241 }
 0x3d9   :  { %v1319_v60 = vmul.f32 %v1242_v40, %v1140_v4 }
 0x3db   :  { %v1531_v57 = vmul.f32 -1.442695, %v1319_v60  ;;  %v1111_v60 = vpop.f32.mrf.mxu0 }
 0x3dc   :  { %v1247_v7 = vpop.permute.xlu0 %1246 }
 0x3dd   :  { %1912 = vpow2.f32 %v1531_v57  ;;  %v1320_v37 = vmul.f32 %v1247_v7, %v1141_v27  ;;  %v1148_v27 = vadd.f32 %v1101_v58, %v971_v43  ;;  %v1771_v7 = vpop.f32.mrf.mxu0 }
 0x3df   :  { %v1532_v52 = vmul.f32 -1.442695, %v1320_v37 }
 0x3e0   :  { %v1257_v31 = vpop.permute.xlu0 %1256 }
 0x3e1   :  { %1914 = vpow2.f32 %v1532_v52  ;;  %v1322_v18 = vmul.f32 %v1257_v31, %v1143_v36 }
 0x3e3   :  { %v1534_v34 = vmul.f32 -1.442695, %v1322_v18  ;;  %v1150_v18 = vadd.f32 %v1111_v60, %v973_v35 }
 0x3e4   :  { %v1252_v0 = vpop.permute.xlu1 %1251 }
 0x3e5   :  { %1916 = vpow2.f32 %v1534_v34  ;;  %v1321_v38 = vmul.f32 %v1252_v0, %v1142_v9  ;;  %v1121_v34 = vpop.f32.mrf.mxu0 }
 0x3e7   :  { %v1533_v21 = vmul.f32 -1.442695, %v1321_v38 }
 0x3e8   :  { %v1267_v45 = vpop.permute.xlu0 %1266 }
 0x3e9   :  { %1918 = vpow2.f32 %v1533_v21  ;;  %v1324_v13 = vmul.f32 %v1267_v45, %v1145_v33  ;;  %v1152_v45 = vadd.f32 %v1121_v34, %v975_v39 }
 0x3ea   :  { %v1913_v42 = vpop.eup %1912 }
 0x3eb   :  { %v1383_v53 = vadd.f32 1.0, %v1913_v42  ;;  %v1536_v61 = vmul.f32 -1.442695, %v1324_v13  ;;  %v1131_v42 = vpop.f32.mrf.mxu1 }
 0x3ec   :  { %v1262_v46 = vpop.permute.xlu1 %1261 }
 0x3ed   :  { %1920 = vrcp.f32 %v1383_v53  ;;  %v1323_v55 = vmul.f32 %v1262_v46, %v1144_v59  ;;  %v977_v53 = vmul.f32 0.0, %v2589_v54  ;;  %v976_v46 = vmul.f32 0.0, %v2587_v62 }
 0x3ee   :  { %v1915_v19 = vpop.eup %1914  ;;  %1922 = vpow2.f32 %v1536_v61 }
 0x3ef   :  { %v1384_v56 = vadd.f32 1.0, %v1915_v19  ;;  %v1535_v63 = vmul.f32 -1.442695, %v1323_v55  ;;  %v1154_v55 = vadd.f32 %v1131_v42, %v977_v53 }
 0x3f0   :  { %v1277_v1 = vpop.permute.xlu0 %1276 }
 0x3f1   :  { %1924 = vrcp.f32 %v1384_v56  ;;  %v1326_v3 = vmul.f32 %v1277_v1, %v1147_v49  ;;  %v1153_v49 = vadd.f32 %v1771_v7, %v976_v46 }
 0x3f2   :  { %v1917_v8 = vpop.eup %1916  ;;  %1926 = vpow2.f32 %v1535_v63 }
 0x3f3   :  { %v1386_v47 = vadd.f32 1.0, %v1917_v8  ;;  %v1538_v32 = vmul.f32 -1.442695, %v1326_v3  ;;  %v978_v3 = vmul.f32 0.0, %v2591_v29 }
 0x3f4   :  { %v1272_v5 = vpop.permute.xlu1 %1271 }
 0x3f5   :  { %1928 = vrcp.f32 %v1386_v47  ;;  %v1287_v4 = vpop.permute.xlu0 %1286  ;;  %v1325_v40 = vmul.f32 %v1272_v5, %v1146_v20  ;;  %v1155_v47 = vadd.f32 %v1774_v24, %v978_v3 }
 0x3f6   :  { %v1919_v23 = vpop.eup %1918  ;;  %1930 = vpow2.f32 %v1538_v32  ;;  %v1328_v41 = vmul.f32 %v1287_v4, %v1149_v22 }
 0x3f7   :  { %v1385_v44 = vadd.f32 1.0, %v1919_v23  ;;  %v1537_v57 = vmul.f32 -1.442695, %v1325_v40 }
 0x3f8   :  { %v1540_v25 = vmul.f32 -1.442695, %v1328_v41  ;;  %v1282_v37 = vpop.permute.xlu1 %1281 }
 0x3f9   :  { %1932 = vrcp.f32 %v1385_v44  ;;  %v1297_v36 = vpop.permute.xlu0 %1296  ;;  %v1327_v52 = vmul.f32 %v1282_v37, %v1148_v27 }
 0x3fa   :  { %v1921_v10 = vpop.eup %1920  ;;  %1934 = vpow2.f32 %v1540_v25  ;;  %v1330_v50 = vmul.f32 %v1297_v36, %v1151_v17 }
 0x3fb   :  { %v1923_v31 = vpop.eup %1922  ;;  %1936 = vpow2.f32 %v1537_v57  ;;  %v1539_v48 = vmul.f32 -1.442695, %v1327_v52  ;;  %v1434_v9 = vsel %vm1431_vm3, %v1921_v10, 0.0 }
 0x3fc   :  { %v1388_v0 = vadd.f32 1.0, %v1923_v31  ;;  %v1542_v15 = vmul.f32 -1.442695, %v1330_v50  ;;  %1450 = vadd.xlane.f32.xlu1 %v1434_v9  ;;  %v1292_v38 = vpop.permute.xlu1 %1291 }
 0x3fd   :  { %1938 = vpow2.f32 %v1539_v48  ;;  %v1329_v26 = vmul.f32 %v1292_v38, %v1150_v18 }
 0x3fe   :  { %v1925_v33 = vpop.eup %1924  ;;  %1940 = vrcp.f32 %v1388_v0 }
 0x3ff   :  { %v1927_v21 = vpop.eup %1926  ;;  %1942 = vpow2.f32 %v1542_v15  ;;  %v1541_v14 = vmul.f32 -1.442695, %v1329_v26  ;;  %v1435_v13 = vsel %vm1431_vm3, %v1925_v33, 0.0 }
 0x400   :  { %v1387_v30 = vadd.f32 1.0, %v1927_v21  ;;  %1452 = vadd.xlane.f32.xlu0 %v1435_v13  ;;  %v1302_v59 = vpop.permute.xlu1 %1301 }
 0x401   :  { %1944 = vpow2.f32 %v1541_v14  ;;  %v1331_v61 = vmul.f32 %v1302_v59, %v1152_v45 }
 0x402   :  { %v1929_v11 = vpop.eup %1928  ;;  %1946 = vrcp.f32 %v1387_v30 }
 0x403   :  { %v1931_v51 = vpop.eup %1930  ;;  %v1543_v19 = vmul.f32 -1.442695, %v1331_v61  ;;  %v1437_v58 = vsel %vm1431_vm3, %v1929_v11, 0.0 }
 0x404   :  { %v1390_v56 = vadd.f32 1.0, %v1931_v51  ;;  %1456 = vadd.xlane.f32.xlu1 %v1437_v58  ;;  %v1312_v63 = vpop.permute.xlu1 %1311 }
 0x405   :  { %1948 = vpow2.f32 %v1543_v19  ;;  %v1307_v1 = vpop.permute.xlu0 %1306  ;;  %v1333_v2 = vmul.f32 %v1312_v63, %v1154_v55 }
 0x406   :  { %v1933_v54 = vpop.eup %1932  ;;  %1950 = vrcp.f32 %v1390_v56  ;;  %v1332_v8 = vmul.f32 %v1307_v1, %v1153_v49 }
 0x407   :  { %v1935_v62 = vpop.eup %1934  ;;  %v1545_v16 = vmul.f32 -1.442695, %v1333_v2  ;;  %v1436_v12 = vsel %vm1431_vm3, %v1933_v54, 0.0 }
 0x408   :  { %v1937_v20 = vpop.eup %1936  ;;  %v1392_v32 = vadd.f32 1.0, %v1935_v62  ;;  %v1544_v22 = vmul.f32 -1.442695, %v1332_v8  ;;  %1454 = vadd.xlane.f32.xlu0 %v1436_v12 }
 0x409   :  { %v1389_v5 = vadd.f32 1.0, %v1937_v20  ;;  %1952 = vpow2.f32 %v1545_v16  ;;  %v1317_v43 = vpop.permute.xlu0 %1316 }
 0x40a   :  { %v1939_v4 = vpop.eup %1938  ;;  %1954 = vrcp.f32 %v1392_v32  ;;  %v1334_v40 = vmul.f32 %v1317_v43, %v1155_v47 }
 0x40b   :  { %v1941_v23 = vpop.eup %1940  ;;  %1956 = vrcp.f32 %v1389_v5  ;;  %v1391_v29 = vadd.f32 1.0, %v1939_v4 }
 0x40c   :  { %v1943_v28 = vpop.eup %1942  ;;  %1958 = vpow2.f32 %v1544_v22  ;;  %v1546_v60 = vmul.f32 -1.442695, %v1334_v40  ;;  %v1439_v41 = vsel %vm1431_vm3, %v1941_v23, 0.0 }
 0x40d   :  { %v1394_v27 = vadd.f32 1.0, %v1943_v28  ;;  %1960 = vrcp.f32 %v1391_v29  ;;  %1460 = vadd.xlane.f32.xlu1 %v1439_v41 }
 0x40e   :  { %v1945_v44 = vpop.eup %1944  ;;  %1962 = vpow2.f32 %v1546_v60 }
 0x40f   :  { %v1947_v57 = vpop.eup %1946  ;;  %1964 = vrcp.f32 %v1394_v27  ;;  %v1393_v17 = vadd.f32 1.0, %v1945_v44 }
 0x410   :  { %v1438_v7 = vsel %vm1431_vm3, %v1947_v57, 0.0 }
 0x411   :  { %1966 = vrcp.f32 %v1393_v17  ;;  %1458 = vadd.xlane.f32.xlu0 %v1438_v7 }
 0x412   :  { %v1949_v25 = vpop.eup %1948 }
 0x413   :  { %v1951_v37 = vpop.eup %1950  ;;  %v1395_v35 = vadd.f32 1.0, %v1949_v25 }
 0x414   :  { %v1441_v36 = vsel %vm1431_vm3, %v1951_v37, 0.0 }
 0x415   :  { %1968 = vrcp.f32 %v1395_v35  ;;  %1464 = vadd.xlane.f32.xlu1 %v1441_v36 }
 0x416   :  { %v1953_v52 = vpop.eup %1952 }
 0x417   :  { %v1955_v10 = vpop.eup %1954  ;;  %v1397_v50 = vadd.f32 1.0, %v1953_v52 }
 0x418   :  { %v1957_v31 = vpop.eup %1956  ;;  %v1443_v24 = vsel %vm1431_vm3, %v1955_v10, 0.0 }
 0x419   :  { %v1959_v18 = vpop.eup %1958  ;;  %1970 = vrcp.f32 %v1397_v50  ;;  %1468 = vadd.xlane.f32.xlu1 %v1443_v24  ;;  %v1440_v48 = vsel %vm1431_vm3, %v1957_v31, 0.0 }
 0x41a   :  { %v1961_v9 = vpop.eup %1960  ;;  %v1396_v34 = vadd.f32 1.0, %v1959_v18  ;;  %1462 = vadd.xlane.f32.xlu0 %v1440_v48 }
 0x41b   :  { %v1963_v0 = vpop.eup %1962  ;;  %v1442_v15 = vsel %vm1431_vm3, %v1961_v9, 0.0 }
 0x41c   :  { %v1965_v38 = vpop.eup %1964  ;;  %1972 = vrcp.f32 %v1396_v34  ;;  %v1398_v39 = vadd.f32 1.0, %v1963_v0 }
 0x41d   :  { %v1445_v26 = vsel %vm1431_vm3, %v1965_v38, 0.0 }
 0x41e   :  { %v1967_v33 = vpop.eup %1966  ;;  %1974 = vrcp.f32 %v1398_v39  ;;  %1472 = vadd.xlane.f32.xlu1 %v1445_v26  ;;  %1466 = vadd.xlane.f32.xlu0 %v1442_v15 }
 0x41f   :  { %v1444_v21 = vsel %vm1431_vm3, %v1967_v33, 0.0 }
 0x422   :  { %v1969_v45 = vpop.eup %1968  ;;  %1470 = vadd.xlane.f32.xlu0 %v1444_v21 }
 0x423   :  { %v1446_v14 = vsel %vm1431_vm3, %v1969_v45, 0.0 }
 0x426   :  { %v1971_v13 = vpop.eup %1970  ;;  %1474 = vadd.xlane.f32.xlu0 %v1446_v14 }
 0x427   :  { %v1448_v42 = vsel %vm1431_vm3, %v1971_v13, 0.0 }
 0x429   :  { %v1973_v30 = vpop.eup %1972 }
 0x42a   :  { %v1447_v59 = vsel %vm1431_vm3, %v1973_v30, 0.0  ;;  %1478 = vadd.xlane.f32.xlu0 %v1448_v42 }
 0x42b   :  { %v1975_v53 = vpop.eup %1974  ;;  %1476 = vadd.xlane.f32.xlu1 %v1447_v59 }
 0x42c   :  { %v1449_v61 = vsel %vm1431_vm3, %v1975_v53, 0.0 }
 0x42f   :  { %1480 = vadd.xlane.f32.xlu1 %v1449_v61 }
 0x485   :  { %v1451_v11 = vpop.xlane.xlu1 %1450 }
 0x486   :  { %1482 = vst [vmem:[#allocation9] sm:$0xff] %v1451_v11 }
 0x489   :  { %v1453_v46 = vpop.xlane.xlu0 %1452 }
 0x48a   :  { %1483 = vst [vmem:[#allocation9 + $0x8] sm:$0xff] %v1453_v46 }
 0x48d   :  { %v1457_v51 = vpop.xlane.xlu1 %1456 }
 0x48e   :  { %1485 = vst [vmem:[#allocation9 + $0x18] sm:$0xff] %v1457_v51 }
 0x491   :  { %v1455_v55 = vpop.xlane.xlu0 %1454 }
 0x492   :  { %1484 = vst [vmem:[#allocation9 + $0x10] sm:$0xff] %v1455_v55 }
 0x496   :  { %v1461_v19 = vpop.xlane.xlu1 %1460 }
 0x497   :  { %1487 = vst [vmem:[#allocation9 + $0x28] sm:$0xff] %v1461_v19 }
 0x49a   :  { %v1459_v58 = vpop.xlane.xlu0 %1458 }
 0x49b   :  { %1486 = vst [vmem:[#allocation9 + $0x20] sm:$0xff] %v1459_v58 }
 0x49e   :  { %v1465_v49 = vpop.xlane.xlu1 %1464 }
 0x49f   :  { %1489 = vst [vmem:[#allocation9 + $0x38] sm:$0xff] %v1465_v49 }
 0x4a2   :  { %v1469_v56 = vpop.xlane.xlu1 %1468 }
 0x4a3   :  { %v1463_v63 = vpop.xlane.xlu0 %1462  ;;  %1491 = vst [vmem:[#allocation9 + $0x48] sm:$0xff] %v1469_v56 }
 0x4a4   :  { %1488 = vst [vmem:[#allocation9 + $0x30] sm:$0xff] %v1463_v63 }
 0x4a7   :  { %v1467_v6 = vpop.xlane.xlu0 %1466  ;;  %v1473_v1 = vpop.xlane.xlu1 %1472 }
 0x4a8   :  { %1490 = vst [vmem:[#allocation9 + $0x40] sm:$0xff] %v1467_v6  ;;  %1493 = vst [vmem:[#allocation9 + $0x58] sm:$0xff] %v1473_v1 }
 0x4ab   :  { %v1471_v2 = vpop.xlane.xlu0 %1470 }
 0x4ac   :  { %1492 = vst [vmem:[#allocation9 + $0x50] sm:$0xff] %v1471_v2 }
 0x4af   :  { %v1475_v54 = vpop.xlane.xlu0 %1474 }
 0x4b0   :  { %1494 = vst [vmem:[#allocation9 + $0x60] sm:$0xff] %v1475_v54 }
 0x4b3   :  { %v1479_v3 = vpop.xlane.xlu0 %1478 }
 0x4b4   :  { %1496 = vst [vmem:[#allocation9 + $0x70] sm:$0xff] %v1479_v3  ;;  %v1477_v8 = vpop.xlane.xlu1 %1476 }
 0x4b5   :  { %1495 = vst [vmem:[#allocation9 + $0x68] sm:$0xff] %v1477_v8 }
 0x4b8   :  { %v1481_v62 = vpop.xlane.xlu1 %1480 }
 0x4b9   :  { %1497 = vst [vmem:[#allocation9 + $0x78] sm:$0xff] %v1481_v62 }
 0x4ba   :  { %2007 = shalt.err (!%p2004_p9)
}
 0x4bb   :  { %1509 = dma.vmem_to_hbm [thread:$0]  %s1504_s2, 2048, %s2644_s4, [#allocation8], %s2021_s18, %s2021_s18, %s2022_s19  }
 0x4bc   :  { %2018 = dma.done.wait [#allocation8], 2048  }
 0x4bd   :  { %2019 = vsyncadd [#allocation8], 4294965248 }
 0x4be   :  { %1513 = vsyncpa [#allocation7], 1 }
 0x4bf   :  { %1514 = vsyncpa [#allocation8], 1 }

</bundles_post_ra>
